<compile_context>
chip_gen: v6e
topology: v6e:2x2x1
jax: 0.10.0
libtpu: 0.0.40
codegen_flags: <defaults>
</compile_context>

<pallas_src>
import functools

import jax
import jax.numpy as jnp
from jax.experimental import pallas as pl
from jax.experimental.pallas import tpu as pltpu


# ----------------------------- helpers --------------------------------------

def _gelu(x):
    # tanh approximation of GELU (used in both kernel and reference).
    c = 0.7978845608028654  # sqrt(2/pi)
    return 0.5 * x * (1.0 + jnp.tanh(c * (x + 0.044715 * x * x * x)))


def _pick_row_tile(dim, pref):
    """Largest multiple of 8 that divides `dim` and is <= pref, else full dim."""
    if dim <= pref:
        return dim
    t = (pref // 8) * 8
    while t >= 8:
        if dim % t == 0:
            return t
        t -= 8
    return dim


def _pick_lane_tile(dim, pref):
    """Largest multiple of 128 that divides `dim` and is <= pref, else full dim."""
    if dim <= pref:
        return dim
    t = (pref // 128) * 128
    while t >= 128:
        if dim % t == 0:
            return t
        t -= 128
    return dim


# ----------------------------- Pallas kernels -------------------------------

def _linear_kernel(x_ref, wt_ref, b_ref, *rest, n_k, activation, has_residual,
                   fuse_ln, eps):
    """y = [LN](x) @ W_t + b [ + gelu ] [ + residual ].

    W_t is pre-transposed (K, Kout): no transpose in-kernel.  x / W_t / residual
    are bf16 (MXU-native); the accumulator, LN statistics, bias, GELU and the
    residual add are all f32.
    """
    rest = list(rest)
    if fuse_ln:
        g_ref = rest.pop(0)
        beta_ref = rest.pop(0)
    if has_residual:
        res_ref = rest.pop(0)
    o_ref, acc_ref = rest

    k = pl.program_id(2)

    @pl.when(k == 0)
    def _init():
        acc_ref[...] = jnp.zeros_like(acc_ref)

    x = x_ref[...]                                      # (tm, tk) bf16
    if fuse_ln:
        # Fused LayerNorm over the full feature dim (tk == K); stats in f32.
        xf = x.astype(jnp.float32)
        mean = jnp.mean(xf, axis=-1, keepdims=True)
        xc = xf - mean
        var = jnp.mean(xc * xc, axis=-1, keepdims=True)
        y = xc * jax.lax.rsqrt(var + eps) * g_ref[...] + beta_ref[...]
        x = y.astype(x_ref.dtype)                       # back to bf16 for MXU

    acc_ref[...] += jnp.dot(x, wt_ref[...], preferred_element_type=jnp.float32)

    @pl.when(k == n_k - 1)
    def _finalize():
        y = acc_ref[...] + b_ref[...]                   # bias kept in f32
        if activation == "gelu":
            y = _gelu(y)
        if has_residual:
            y = y + res_ref[...].astype(jnp.float32)
        o_ref[...] = y.astype(o_ref.dtype)


def _attn_kernel(q_ref, k_ref, v_ref, o_ref, acc_ref, m_ref, l_ref,
                 *, scale, n_kv):
    """Flash-style attention for one (batch*head, q-tile, kv-tile) grid step.

    q_ref: (1, tq, hd) bf16; k_ref / v_ref: (1, tkv, hd) bf16.
    acc (tq, hd), m/l (tq, 1) are f32 VMEM scratch that live across the kv axis.
    """
    kv = pl.program_id(2)

    @pl.when(kv == 0)
    def _init():
        acc_ref[...] = jnp.zeros_like(acc_ref)
        m_ref[...] = jnp.full_like(m_ref, -1e30)
        l_ref[...] = jnp.zeros_like(l_ref)

    q = q_ref[0]                                        # (tq, hd)  bf16
    k = k_ref[0]                                        # (tkv, hd) bf16
    v = v_ref[0]                                        # (tkv, hd) bf16

    # s = q @ k^T with f32 accumulation; softmax scale applied in f32.
    s = jax.lax.dot_general(q, k, (((1,), (1,)), ((), ())),
                            preferred_element_type=jnp.float32) * scale  # (tq, tkv)

    m_prev = m_ref[...]                                 # (tq, 1) f32
    l_prev = l_ref[...]
    m_new = jnp.maximum(m_prev, jnp.max(s, axis=-1, keepdims=True))
    alpha = jnp.exp(m_prev - m_new)
    p = jnp.exp(s - m_new)                              # f32
    l_ref[...] = alpha * l_prev + jnp.sum(p, axis=-1, keepdims=True)
    m_ref[...] = m_new
    acc_ref[...] = alpha * acc_ref[...] + jnp.dot(
        p.astype(v.dtype), v, preferred_element_type=jnp.float32)

    @pl.when(kv == n_kv - 1)
    def _finalize():
        inv_l = pl.reciprocal(l_ref[...], approx=True)  # EUP slot
        o_ref[0] = (acc_ref[...] * inv_l).astype(o_ref.dtype)


# ------------------------------ wrappers -------------------------------------

def linear_pallas(x, wt, b, *, residual=None, activation=None,
                  ln_gamma=None, ln_beta=None, ln_eps=1e-6,
                  tm=512, tn=512, tk=1024):
    """y = [LN](x) @ wt + b [ + gelu ] [ + residual ].  wt pre-transposed (K, Kout)."""
    M, K = x.shape
    K2, Kout = wt.shape
    assert K2 == K
    fuse_ln = ln_gamma is not None

    tm = _pick_row_tile(M, tm)
    tn = _pick_lane_tile(Kout, tn)
    tk = K if fuse_ln else _pick_lane_tile(K, tk)   # LN needs the full K row
    n_k = K // tk
    has_residual = residual is not None

    in_specs = [pl.BlockSpec((tm, tk), lambda i, j, k: (i, k)),
                pl.BlockSpec((tk, tn), lambda i, j, k: (k, j)),
                pl.BlockSpec((1, tn), lambda i, j, k: (0, j))]
    args = [x, wt, b.reshape(1, Kout).astype(jnp.float32)]
    if fuse_ln:
        in_specs += [pl.BlockSpec((1, K), lambda i, j, k: (0, 0)),
                     pl.BlockSpec((1, K), lambda i, j, k: (0, 0))]
        args += [ln_gamma.reshape(1, K).astype(jnp.float32),
                 ln_beta.reshape(1, K).astype(jnp.float32)]
    if has_residual:
        in_specs.append(pl.BlockSpec((tm, tn), lambda i, j, k: (i, j)))
        args.append(residual)

    itemsize = x.dtype.itemsize
    bytes_accessed = int((M * K + K * Kout + M * Kout
                          + (M * Kout if has_residual else 0)) * itemsize
                         + Kout * 4)
    kern = functools.partial(_linear_kernel, n_k=n_k, activation=activation,
                             has_residual=has_residual, fuse_ln=fuse_ln,
                             eps=ln_eps)
    return pl.pallas_call(
        kern,
        out_shape=jax.ShapeDtypeStruct((M, Kout), x.dtype),
        grid=(M // tm, Kout // tn, n_k),
        in_specs=in_specs,
        out_specs=pl.BlockSpec((tm, tn), lambda i, j, k: (i, j)),
        scratch_shapes=[pltpu.VMEM((tm, tn), jnp.float32)],
        compiler_params=pltpu.CompilerParams(
            dimension_semantics=("parallel", "parallel", "arbitrary")),
        cost_estimate=pl.CostEstimate(
            flops=2 * M * K * Kout,
            transcendentals=(M * Kout if activation == "gelu" else 0),
            bytes_accessed=bytes_accessed),
    )(*args)


def attention_pallas(q, k, v, *, q_tile=256, kv_tile=256):
    """Flash attention.  q/k/v: (B*H, N, hd) bf16 -> (B*H, N, hd)."""
    BH, N, hd = q.shape
    tq = _pick_row_tile(N, q_tile)
    tkv = _pick_row_tile(N, kv_tile)
    n_q = N // tq
    n_kv = N // tkv
    scale = hd ** (-0.5)

    kern = functools.partial(_attn_kernel, scale=scale, n_kv=n_kv)
    itemsize = q.dtype.itemsize
    return pl.pallas_call(
        kern,
        out_shape=jax.ShapeDtypeStruct((BH, N, hd), q.dtype),
        grid=(BH, n_q, n_kv),
        in_specs=[pl.BlockSpec((1, tq, hd), lambda bh, qi, kv: (bh, qi, 0)),
                  pl.BlockSpec((1, tkv, hd), lambda bh, qi, kv: (bh, kv, 0)),
                  pl.BlockSpec((1, tkv, hd), lambda bh, qi, kv: (bh, kv, 0))],
        out_specs=pl.BlockSpec((1, tq, hd), lambda bh, qi, kv: (bh, qi, 0)),
        scratch_shapes=[pltpu.VMEM((tq, hd), jnp.float32),
                        pltpu.VMEM((tq, 1), jnp.float32),
                        pltpu.VMEM((tq, 1), jnp.float32)],
        compiler_params=pltpu.CompilerParams(
            dimension_semantics=("parallel", "parallel", "arbitrary")),
        cost_estimate=pl.CostEstimate(
            flops=4 * BH * N * N * hd,
            transcendentals=BH * N * N,
            bytes_accessed=int(4 * BH * N * hd * itemsize)),
    )(q, k, v)


def encoder_layer_forward(x, params, *, num_heads, q_tile=256, kv_tile=256):
    """EncoderLayer.forward (inference: dropouts are identity).  x: (B, N, C) bf16."""
    B, N, C = x.shape
    H = num_heads
    hd = C // H
    x2 = x.reshape(B * N, C)

    # ---- attention block: ln_1 (fused) -> QKV -> attention -> out-proj (+res) ----
    qkv = linear_pallas(x2, params["w_qkv_t"], params["b_qkv"],
                        ln_gamma=params["ln1_g"], ln_beta=params["ln1_b"])   # (B*N, 3C)
    qkvh = qkv.reshape(B, N, 3, H, hd).transpose(2, 0, 3, 1, 4)              # (3,B,H,N,hd)
    q = qkvh[0].reshape(B * H, N, hd)
    k = qkvh[1].reshape(B * H, N, hd)
    v = qkvh[2].reshape(B * H, N, hd)
    attn = attention_pallas(q, k, v, q_tile=q_tile, kv_tile=kv_tile)         # (B*H, N, hd)
    attn = attn.reshape(B, H, N, hd).transpose(0, 2, 1, 3).reshape(B * N, C)
    x2 = linear_pallas(attn, params["w_out_t"], params["b_out"], residual=x2)

    # ---- MLP block: ln_2 (fused) -> fc1 (+GELU fused) -> fc2 (+residual fused) ----
    h = linear_pallas(x2, params["w_fc1_t"], params["b_fc1"],
                      ln_gamma=params["ln2_g"], ln_beta=params["ln2_b"],
                      activation="gelu")
    x2 = linear_pallas(h, params["w_fc2_t"], params["b_fc2"], residual=x2)

    return x2.reshape(B, N, C)


# -------------------------- reference (pure JAX, f32) -------------------------

def encoder_layer_ref(x, params, num_heads):
    """f32 reference computed from the same (bf16-rounded) inputs/weights."""
    f32 = lambda t: t.astype(jnp.float32)
    x = f32(x)
    B, N, C = x.shape
    hd = C // num_heads
    eps = 1e-6

    def ln(v, g, b):
        m = v.mean(-1, keepdims=True)
        var = ((v - m) ** 2).mean(-1, keepdims=True)
        return (v - m) * jax.lax.rsqrt(var + eps) * g + b

    def heads(t):
        return t.reshape(B, N, num_heads, hd).transpose(0, 2, 1, 3)

    h = ln(x, f32(params["ln1_g"]), f32(params["ln1_b"]))
    qkv = h @ f32(params["w_qkv_t"]) + f32(params["b_qkv"])
    q, k, v = jnp.split(qkv, 3, axis=-1)
    q, k, v = heads(q), heads(k), heads(v)
    s = jnp.einsum("bhnd,bhmd->bhnm", q, k) * (hd ** -0.5)
    p = jax.nn.softmax(s, axis=-1)
    o = jnp.einsum("bhnm,bhmd->bhnd", p, v).transpose(0, 2, 1, 3).reshape(B, N, C)
    x = x + (o @ f32(params["w_out_t"]) + f32(params["b_out"]))

    h = ln(x, f32(params["ln2_g"]), f32(params["ln2_b"]))
    h = _gelu(h @ f32(params["w_fc1_t"]) + f32(params["b_fc1"]))
    x = x + (h @ f32(params["w_fc2_t"]) + f32(params["b_fc2"]))
    return x


# --------------------------------- main ---------------------------------------

def init_params(key, hidden_dim, mlp_dim):
    ks = jax.random.split(key, 8)

    def lin(kw, kb, fan_in, fan_out):
        bound = 1.0 / (fan_in ** 0.5)
        w = jax.random.uniform(kw, (fan_out, fan_in), jnp.float32, -bound, bound)
        b = jax.random.uniform(kb, (fan_out,), jnp.float32, -bound, bound)
        # Weights pre-transposed (K, Kout) and stored in bf16 (MXU-native);
        # biases and LN affine params stay f32 (tiny, added in f32 anyway).
        return w.T.astype(jnp.bfloat16), b

    w_qkv_t, b_qkv = lin(ks[0], ks[1], hidden_dim, 3 * hidden_dim)
    w_out_t, b_out = lin(ks[2], ks[3], hidden_dim, hidden_dim)
    w_fc1_t, b_fc1 = lin(ks[4], ks[5], hidden_dim, mlp_dim)
    w_fc2_t, b_fc2 = lin(ks[6], ks[7], mlp_dim, hidden_dim)
    return {
        "ln1_g": jnp.ones((hidden_dim,), jnp.float32),
        "ln1_b": jnp.zeros((hidden_dim,), jnp.float32),
        "ln2_g": jnp.ones((hidden_dim,), jnp.float32),
        "ln2_b": jnp.zeros((hidden_dim,), jnp.float32),
        "w_qkv_t": w_qkv_t, "b_qkv": b_qkv,
        "w_out_t": w_out_t, "b_out": b_out,
        "w_fc1_t": w_fc1_t, "b_fc1": b_fc1,
        "w_fc2_t": w_fc2_t, "b_fc2": b_fc2,
    }


if __name__ == "__main__":
    B, N = 2, 16                                   # batch, sequence
    hidden_dim, num_heads, mlp_dim = 128, 4, 256   # lane-friendly small dims

    key = jax.random.PRNGKey(0)
    kx, kp = jax.random.split(key)
    x_f32 = jax.random.normal(kx, (B, N, hidden_dim), dtype=jnp.float32)
    params = init_params(kp, hidden_dim, mlp_dim)

    x = x_f32.astype(jnp.bfloat16)                 # bf16 activations end-to-end
    forward = jax.jit(functools.partial(encoder_layer_forward,
                                        num_heads=num_heads))
    out = jax.block_until_ready(forward(x, params))

    ref = encoder_layer_ref(x, params, num_heads)  # f32 math on same bf16 inputs
    assert out.shape == (B, N, hidden_dim)
    out_f32 = out.astype(jnp.float32)
    max_err = float(jnp.max(jnp.abs(out_f32 - ref)))
    assert jnp.allclose(out_f32, ref, atol=5e-2, rtol=5e-2), \
        f"mismatch vs ref: max abs err = {max_err}"

    print("KERNEL_OK")
</pallas_src>

<mosaic_0001>
module attributes {stable_mosaic.version = 11 : i64} {
  func.func @_linear_kernel(%arg0: i32, %arg1: i32, %arg2: i32, %arg3: memref<32x128xbf16, #tpu.memory_space<vmem>>, %arg4: memref<128x384xbf16, #tpu.memory_space<vmem>>, %arg5: memref<1x384xf32, #tpu.memory_space<vmem>>, %arg6: memref<1x128xf32, #tpu.memory_space<vmem>>, %arg7: memref<1x128xf32, #tpu.memory_space<vmem>>, %arg8: memref<32x384xbf16, #tpu.memory_space<vmem>>, %arg9: memref<32x384xf32, #tpu.memory_space<vmem>>) attributes {dimension_semantics = [#tpu.dimension_semantics<parallel>, #tpu.dimension_semantics<parallel>, #tpu.dimension_semantics<arbitrary>], iteration_bounds = array<i64: 1, 1, 1>, scalar_prefetch = 0 : i64, scratch_operands = 1 : i64, tpu.core_type = #tpu.core_type<tc>, window_params = [{transform_indices = @transform_0, window_bounds = array<i64: 32, 128>}, {transform_indices = @transform_1, window_bounds = array<i64: 128, 384>}, {transform_indices = @transform_2, window_bounds = array<i64: 1, 384>}, {pipeline_mode = #tpu.pipeline_mode<synchronous>, transform_indices = @transform_3, window_bounds = array<i64: 1, 128>}, {pipeline_mode = #tpu.pipeline_mode<synchronous>, transform_indices = @transform_4, window_bounds = array<i64: 1, 128>}, {transform_indices = @transform_5, window_bounds = array<i64: 32, 384>}]} {
    %c0_i32 = arith.constant 0 : i32
    %0 = arith.cmpi eq, %arg2, %c0_i32 : i32
    %1 = arith.extui %0 : i1 to i32
    %c0_i32_0 = arith.constant 0 : i32
    %2 = arith.cmpi ne, %1, %c0_i32_0 : i32
    scf.if %2 {
      %cst_19 = arith.constant 0.000000e+00 : f32
      %36 = vector.broadcast %cst_19 : f32 to vector<32x384xf32>
      %c0_20 = arith.constant 0 : index
      %c0_21 = arith.constant 0 : index
      %37 = vector.load %arg9[%c0_20, %c0_21] : memref<32x384xf32, #tpu.memory_space<vmem>>, vector<32x384xf32>
      tpu.vector_store %arg9[%c0_20, %c0_21], %36 {strides = array<i32>} : memref<32x384xf32, #tpu.memory_space<vmem>>, vector<32x384xf32>,
    } else {
    }
    %c0 = arith.constant 0 : index
    %c0_1 = arith.constant 0 : index
    %3 = vector.load %arg3[%c0, %c0_1] : memref<32x128xbf16, #tpu.memory_space<vmem>>, vector<32x128xbf16>
    %4 = arith.extf %3 : vector<32x128xbf16> to vector<32x128xf32>
    %cst = arith.constant dense<0.000000e+00> : vector<32xf32>
    %5 = vector.multi_reduction <add>, %4, %cst [1] : vector<32x128xf32> to vector<32xf32>
    %6 = vector.shape_cast %5 : vector<32xf32> to vector<32x1xf32>
    %cst_2 = arith.constant 1.280000e+02 : f32
    %7 = vector.broadcast %cst_2 : f32 to vector<32x1xf32>
    %8 = arith.divf %6, %7 : vector<32x1xf32>
    %9 = vector.broadcast %8 : vector<32x1xf32> to vector<32x128xf32>
    %10 = arith.subf %4, %9 : vector<32x128xf32>
    %11 = arith.mulf %10, %10 : vector<32x128xf32>
    %cst_3 = arith.constant dense<0.000000e+00> : vector<32xf32>
    %12 = vector.multi_reduction <add>, %11, %cst_3 [1] : vector<32x128xf32> to vector<32xf32>
    %13 = vector.shape_cast %12 : vector<32xf32> to vector<32x1xf32>
    %cst_4 = arith.constant 1.280000e+02 : f32
    %14 = vector.broadcast %cst_4 : f32 to vector<32x1xf32>
    %15 = arith.divf %13, %14 : vector<32x1xf32>
    %cst_5 = arith.constant 9.99999997E-7 : f32
    %16 = vector.broadcast %cst_5 : f32 to vector<32x1xf32>
    %17 = arith.addf %15, %16 : vector<32x1xf32>
    %18 = math.rsqrt %17 : vector<32x1xf32>
    %19 = vector.broadcast %18 : vector<32x1xf32> to vector<32x128xf32>
    %20 = arith.mulf %10, %19 : vector<32x128xf32>
    %c0_6 = arith.constant 0 : index
    %c0_7 = arith.constant 0 : index
    %21 = vector.load %arg6[%c0_6, %c0_7] : memref<1x128xf32, #tpu.memory_space<vmem>>, vector<1x128xf32>
    %22 = vector.broadcast %21 : vector<1x128xf32> to vector<32x128xf32>
    %23 = arith.mulf %20, %22 : vector<32x128xf32>
    %c0_8 = arith.constant 0 : index
    %c0_9 = arith.constant 0 : index
    %24 = vector.load %arg7[%c0_8, %c0_9] : memref<1x128xf32, #tpu.memory_space<vmem>>, vector<1x128xf32>
    %25 = vector.broadcast %24 : vector<1x128xf32> to vector<32x128xf32>
    %26 = arith.addf %23, %25 : vector<32x128xf32>
    %27 = arith.truncf %26 : vector<32x128xf32> to vector<32x128xbf16>
    %c0_10 = arith.constant 0 : index
    %c0_11 = arith.constant 0 : index
    %28 = vector.load %arg9[%c0_10, %c0_11] : memref<32x384xf32, #tpu.memory_space<vmem>>, vector<32x384xf32>
    %c0_12 = arith.constant 0 : index
    %c0_13 = arith.constant 0 : index
    %29 = vector.load %arg4[%c0_12, %c0_13] : memref<128x384xbf16, #tpu.memory_space<vmem>>, vector<128x384xbf16>
    %cst_14 = arith.constant dense<0.000000e+00> : vector<32x384xf32>
    %30 = tpu.matmul %27, %29, %cst_14 {dimension_numbers = #tpu.dot_dimension_numbers<[1], [0], [0], [1], [0, 0, 1, 1], [], []>} : vector<32x128xbf16>, vector<128x384xbf16>, vector<32x384xf32> -> vector<32x384xf32>
    %31 = arith.addf %28, %30 : vector<32x384xf32>
    %c0_15 = arith.constant 0 : index
    %c0_16 = arith.constant 0 : index
    %32 = vector.load %arg9[%c0_15, %c0_16] : memref<32x384xf32, #tpu.memory_space<vmem>>, vector<32x384xf32>
    tpu.vector_store %arg9[%c0_15, %c0_16], %31 {strides = array<i32>} : memref<32x384xf32, #tpu.memory_space<vmem>>, vector<32x384xf32>,
    %c0_i32_17 = arith.constant 0 : i32
    %33 = arith.cmpi eq, %arg2, %c0_i32_17 : i32
    %34 = arith.extui %33 : i1 to i32
    %c0_i32_18 = arith.constant 0 : i32
    %35 = arith.cmpi ne, %34, %c0_i32_18 : i32
    scf.if %35 {
      %c0_19 = arith.constant 0 : index
      %c0_20 = arith.constant 0 : index
      %36 = vector.load %arg9[%c0_19, %c0_20] : memref<32x384xf32, #tpu.memory_space<vmem>>, vector<32x384xf32>
      %c0_21 = arith.constant 0 : index
      %c0_22 = arith.constant 0 : index
      %37 = vector.load %arg5[%c0_21, %c0_22] : memref<1x384xf32, #tpu.memory_space<vmem>>, vector<1x384xf32>
      %38 = vector.broadcast %37 : vector<1x384xf32> to vector<32x384xf32>
      %39 = arith.addf %36, %38 : vector<32x384xf32>
      %40 = arith.truncf %39 : vector<32x384xf32> to vector<32x384xbf16>
      %c0_23 = arith.constant 0 : index
      %c0_24 = arith.constant 0 : index
      %41 = vector.load %arg8[%c0_23, %c0_24] : memref<32x384xbf16, #tpu.memory_space<vmem>>, vector<32x384xbf16>
      tpu.vector_store %arg8[%c0_23, %c0_24], %40 {strides = array<i32>} : memref<32x384xbf16, #tpu.memory_space<vmem>>, vector<32x384xbf16>,
    } else {
    }
    return
  }
  func.func @transform_0(%arg0: i32, %arg1: i32, %arg2: i32) -> (i32, i32) {
    %c0_i32 = arith.constant 0 : i32
    return %arg0, %arg2 : i32, i32
  }
  func.func @transform_1(%arg0: i32, %arg1: i32, %arg2: i32) -> (i32, i32) {
    %c0_i32 = arith.constant 0 : i32
    return %arg2, %arg1 : i32, i32
  }
  func.func @transform_2(%arg0: i32, %arg1: i32, %arg2: i32) -> (i32, i32) {
    %c0_i32 = arith.constant 0 : i32
    %c0_i32_0 = arith.constant 0 : i32
    return %c0_i32, %arg1 : i32, i32
  }
  func.func @transform_3(%arg0: i32, %arg1: i32, %arg2: i32) -> (i32, i32) {
    %c0_i32 = arith.constant 0 : i32
    %c0_i32_0 = arith.constant 0 : i32
    %c0_i32_1 = arith.constant 0 : i32
    return %c0_i32, %c0_i32_0 : i32, i32
  }
  func.func @transform_4(%arg0: i32, %arg1: i32, %arg2: i32) -> (i32, i32) {
    %c0_i32 = arith.constant 0 : i32
    %c0_i32_0 = arith.constant 0 : i32
    %c0_i32_1 = arith.constant 0 : i32
    return %c0_i32, %c0_i32_0 : i32, i32
  }
  func.func @transform_5(%arg0: i32, %arg1: i32, %arg2: i32) -> (i32, i32) {
    %c0_i32 = arith.constant 0 : i32
    return %arg0, %arg1 : i32, i32
  }
}

module attributes {stable_mosaic.version = 11 : i64} {
  func.func @_linear_kernel(%arg0: i32, %arg1: i32, %arg2: i32, %arg3: memref<32x128xbf16, #tpu.memory_space<vmem>>, %arg4: memref<128x128xbf16, #tpu.memory_space<vmem>>, %arg5: memref<1x128xf32, #tpu.memory_space<vmem>>, %arg6: memref<32x128xbf16, #tpu.memory_space<vmem>>, %arg7: memref<32x128xbf16, #tpu.memory_space<vmem>>, %arg8: memref<32x128xf32, #tpu.memory_space<vmem>>) attributes {dimension_semantics = [#tpu.dimension_semantics<parallel>, #tpu.dimension_semantics<parallel>, #tpu.dimension_semantics<arbitrary>], iteration_bounds = array<i64: 1, 1, 1>, scalar_prefetch = 0 : i64, scratch_operands = 1 : i64, tpu.core_type = #tpu.core_type<tc>, window_params = [{transform_indices = @transform_0, window_bounds = array<i64: 32, 128>}, {transform_indices = @transform_1, window_bounds = array<i64: 128, 128>}, {transform_indices = @transform_2, window_bounds = array<i64: 1, 128>}, {transform_indices = @transform_3, window_bounds = array<i64: 32, 128>}, {transform_indices = @transform_4, window_bounds = array<i64: 32, 128>}]} {
    %c0_i32 = arith.constant 0 : i32
    %0 = arith.cmpi eq, %arg2, %c0_i32 : i32
    %1 = arith.extui %0 : i1 to i32
    %c0_i32_0 = arith.constant 0 : i32
    %2 = arith.cmpi ne, %1, %c0_i32_0 : i32
    scf.if %2 {
      %cst_10 = arith.constant 0.000000e+00 : f32
      %12 = vector.broadcast %cst_10 : f32 to vector<32x128xf32>
      %c0_11 = arith.constant 0 : index
      %c0_12 = arith.constant 0 : index
      %13 = vector.load %arg8[%c0_11, %c0_12] : memref<32x128xf32, #tpu.memory_space<vmem>>, vector<32x128xf32>
      tpu.vector_store %arg8[%c0_11, %c0_12], %12 {strides = array<i32>} : memref<32x128xf32, #tpu.memory_space<vmem>>, vector<32x128xf32>,
    } else {
    }
    %c0 = arith.constant 0 : index
    %c0_1 = arith.constant 0 : index
    %3 = vector.load %arg3[%c0, %c0_1] : memref<32x128xbf16, #tpu.memory_space<vmem>>, vector<32x128xbf16>
    %c0_2 = arith.constant 0 : index
    %c0_3 = arith.constant 0 : index
    %4 = vector.load %arg8[%c0_2, %c0_3] : memref<32x128xf32, #tpu.memory_space<vmem>>, vector<32x128xf32>
    %c0_4 = arith.constant 0 : index
    %c0_5 = arith.constant 0 : index
    %5 = vector.load %arg4[%c0_4, %c0_5] : memref<128x128xbf16, #tpu.memory_space<vmem>>, vector<128x128xbf16>
    %cst = arith.constant dense<0.000000e+00> : vector<32x128xf32>
    %6 = tpu.matmul %3, %5, %cst {dimension_numbers = #tpu.dot_dimension_numbers<[1], [0], [0], [1], [0, 0, 1, 1], [], []>} : vector<32x128xbf16>, vector<128x128xbf16>, vector<32x128xf32> -> vector<32x128xf32>
    %7 = arith.addf %4, %6 : vector<32x128xf32>
    %c0_6 = arith.constant 0 : index
    %c0_7 = arith.constant 0 : index
    %8 = vector.load %arg8[%c0_6, %c0_7] : memref<32x128xf32, #tpu.memory_space<vmem>>, vector<32x128xf32>
    tpu.vector_store %arg8[%c0_6, %c0_7], %7 {strides = array<i32>} : memref<32x128xf32, #tpu.memory_space<vmem>>, vector<32x128xf32>,
    %c0_i32_8 = arith.constant 0 : i32
    %9 = arith.cmpi eq, %arg2, %c0_i32_8 : i32
    %10 = arith.extui %9 : i1 to i32
    %c0_i32_9 = arith.constant 0 : i32
    %11 = arith.cmpi ne, %10, %c0_i32_9 : i32
    scf.if %11 {
      %c0_10 = arith.constant 0 : index
      %c0_11 = arith.constant 0 : index
      %12 = vector.load %arg8[%c0_10, %c0_11] : memref<32x128xf32, #tpu.memory_space<vmem>>, vector<32x128xf32>
      %c0_12 = arith.constant 0 : index
      %c0_13 = arith.constant 0 : index
      %13 = vector.load %arg5[%c0_12, %c0_13] : memref<1x128xf32, #tpu.memory_space<vmem>>, vector<1x128xf32>
      %14 = vector.broadcast %13 : vector<1x128xf32> to vector<32x128xf32>
      %15 = arith.addf %12, %14 : vector<32x128xf32>
      %c0_14 = arith.constant 0 : index
      %c0_15 = arith.constant 0 : index
      %16 = vector.load %arg6[%c0_14, %c0_15] : memref<32x128xbf16, #tpu.memory_space<vmem>>, vector<32x128xbf16>
      %17 = arith.extf %16 : vector<32x128xbf16> to vector<32x128xf32>
      %18 = arith.addf %15, %17 : vector<32x128xf32>
      %19 = arith.truncf %18 : vector<32x128xf32> to vector<32x128xbf16>
      %c0_16 = arith.constant 0 : index
      %c0_17 = arith.constant 0 : index
      %20 = vector.load %arg7[%c0_16, %c0_17] : memref<32x128xbf16, #tpu.memory_space<vmem>>, vector<32x128xbf16>
      tpu.vector_store %arg7[%c0_16, %c0_17], %19 {strides = array<i32>} : memref<32x128xbf16, #tpu.memory_space<vmem>>, vector<32x128xbf16>,
    } else {
    }
    return
  }
  func.func @transform_0(%arg0: i32, %arg1: i32, %arg2: i32) -> (i32, i32) {
    %c0_i32 = arith.constant 0 : i32
    return %arg0, %arg2 : i32, i32
  }
  func.func @transform_1(%arg0: i32, %arg1: i32, %arg2: i32) -> (i32, i32) {
    %c0_i32 = arith.constant 0 : i32
    return %arg2, %arg1 : i32, i32
  }
  func.func @transform_2(%arg0: i32, %arg1: i32, %arg2: i32) -> (i32, i32) {
    %c0_i32 = arith.constant 0 : i32
    %c0_i32_0 = arith.constant 0 : i32
    return %c0_i32, %arg1 : i32, i32
  }
  func.func @transform_3(%arg0: i32, %arg1: i32, %arg2: i32) -> (i32, i32) {
    %c0_i32 = arith.constant 0 : i32
    return %arg0, %arg1 : i32, i32
  }
  func.func @transform_4(%arg0: i32, %arg1: i32, %arg2: i32) -> (i32, i32) {
    %c0_i32 = arith.constant 0 : i32
    return %arg0, %arg1 : i32, i32
  }
}

module attributes {stable_mosaic.version = 11 : i64} {
  func.func @_attn_kernel(%arg0: i32, %arg1: i32, %arg2: i32, %arg3: memref<1x16x32xbf16, #tpu.memory_space<vmem>>, %arg4: memref<1x16x32xbf16, #tpu.memory_space<vmem>>, %arg5: memref<1x16x32xbf16, #tpu.memory_space<vmem>>, %arg6: memref<1x16x32xbf16, #tpu.memory_space<vmem>>, %arg7: memref<16x32xf32, #tpu.memory_space<vmem>>, %arg8: memref<16x1xf32, #tpu.memory_space<vmem>>, %arg9: memref<16x1xf32, #tpu.memory_space<vmem>>) attributes {dimension_semantics = [#tpu.dimension_semantics<parallel>, #tpu.dimension_semantics<parallel>, #tpu.dimension_semantics<arbitrary>], iteration_bounds = array<i64: 8, 1, 1>, scalar_prefetch = 0 : i64, scratch_operands = 3 : i64, tpu.core_type = #tpu.core_type<tc>, window_params = [{transform_indices = @transform_0, window_bounds = array<i64: 1, 16, 32>}, {transform_indices = @transform_1, window_bounds = array<i64: 1, 16, 32>}, {transform_indices = @transform_2, window_bounds = array<i64: 1, 16, 32>}, {transform_indices = @transform_3, window_bounds = array<i64: 1, 16, 32>}]} {
    %c0_i32 = arith.constant 0 : i32
    %0 = arith.cmpi eq, %arg2, %c0_i32 : i32
    %1 = arith.extui %0 : i1 to i32
    %c0_i32_0 = arith.constant 0 : i32
    %2 = arith.cmpi ne, %1, %c0_i32_0 : i32
    scf.if %2 {
      %cst_27 = arith.constant 0.000000e+00 : f32
      %38 = vector.broadcast %cst_27 : f32 to vector<16x32xf32>
      %c0_28 = arith.constant 0 : index
      %c0_29 = arith.constant 0 : index
      %39 = vector.load %arg7[%c0_28, %c0_29] : memref<16x32xf32, #tpu.memory_space<vmem>>, vector<16x32xf32>
      tpu.vector_store %arg7[%c0_28, %c0_29], %38 {strides = array<i32>} : memref<16x32xf32, #tpu.memory_space<vmem>>, vector<16x32xf32>,
      %cst_30 = arith.constant -1.000000e+30 : f32
      %40 = vector.broadcast %cst_30 : f32 to vector<16x1xf32>
      %c0_31 = arith.constant 0 : index
      %c0_32 = arith.constant 0 : index
      %41 = vector.load %arg8[%c0_31, %c0_32] : memref<16x1xf32, #tpu.memory_space<vmem>>, vector<16x1xf32>
      tpu.vector_store %arg8[%c0_31, %c0_32], %40 {strides = array<i32>} : memref<16x1xf32, #tpu.memory_space<vmem>>, vector<16x1xf32>,
      %cst_33 = arith.constant 0.000000e+00 : f32
      %42 = vector.broadcast %cst_33 : f32 to vector<16x1xf32>
      %c0_34 = arith.constant 0 : index
      %c0_35 = arith.constant 0 : index
      %43 = vector.load %arg9[%c0_34, %c0_35] : memref<16x1xf32, #tpu.memory_space<vmem>>, vector<16x1xf32>
      tpu.vector_store %arg9[%c0_34, %c0_35], %42 {strides = array<i32>} : memref<16x1xf32, #tpu.memory_space<vmem>>, vector<16x1xf32>,
    } else {
    }
    %c0 = arith.constant 0 : index
    %c0_1 = arith.constant 0 : index
    %c0_2 = arith.constant 0 : index
    %3 = vector.load %arg3[%c0, %c0_1, %c0_2] : memref<1x16x32xbf16, #tpu.memory_space<vmem>>, vector<1x16x32xbf16>
    %4 = vector.shape_cast %3 : vector<1x16x32xbf16> to vector<16x32xbf16>
    %c0_3 = arith.constant 0 : index
    %c0_4 = arith.constant 0 : index
    %c0_5 = arith.constant 0 : index
    %5 = vector.load %arg4[%c0_3, %c0_4, %c0_5] : memref<1x16x32xbf16, #tpu.memory_space<vmem>>, vector<1x16x32xbf16>
    %6 = vector.shape_cast %5 : vector<1x16x32xbf16> to vector<16x32xbf16>
    %c0_6 = arith.constant 0 : index
    %c0_7 = arith.constant 0 : index
    %c0_8 = arith.constant 0 : index
    %7 = vector.load %arg5[%c0_6, %c0_7, %c0_8] : memref<1x16x32xbf16, #tpu.memory_space<vmem>>, vector<1x16x32xbf16>
    %8 = vector.shape_cast %7 : vector<1x16x32xbf16> to vector<16x32xbf16>
    %cst = arith.constant dense<0.000000e+00> : vector<16x16xf32>
    %9 = tpu.matmul %4, %6, %cst {dimension_numbers = #tpu.dot_dimension_numbers<[1], [1], [0], [0], [0, 0, 1, 0], [], []>} : vector<16x32xbf16>, vector<16x32xbf16>, vector<16x16xf32> -> vector<16x16xf32>
    %cst_9 = arith.constant 0.176776692 : f32
    %10 = vector.broadcast %cst_9 : f32 to vector<16x16xf32>
    %11 = arith.mulf %9, %10 : vector<16x16xf32>
    %c0_10 = arith.constant 0 : index
    %c0_11 = arith.constant 0 : index
    %12 = vector.load %arg8[%c0_10, %c0_11] : memref<16x1xf32, #tpu.memory_space<vmem>>, vector<16x1xf32>
    %c0_12 = arith.constant 0 : index
    %c0_13 = arith.constant 0 : index
    %13 = vector.load %arg9[%c0_12, %c0_13] : memref<16x1xf32, #tpu.memory_space<vmem>>, vector<16x1xf32>
    %cst_14 = arith.constant dense<0xFF800000> : vector<16xf32>
    %14 = vector.multi_reduction <maximumf>, %11, %cst_14 [1] : vector<16x16xf32> to vector<16xf32>
    %15 = vector.shape_cast %14 : vector<16xf32> to vector<16x1xf32>
    %16 = arith.maximumf %12, %15 : vector<16x1xf32>
    %17 = arith.subf %12, %16 : vector<16x1xf32>
    %18 = math.exp %17 : vector<16x1xf32>
    %19 = vector.broadcast %16 : vector<16x1xf32> to vector<16x16xf32>
    %20 = arith.subf %11, %19 : vector<16x16xf32>
    %21 = math.exp %20 : vector<16x16xf32>
    %22 = arith.mulf %18, %13 : vector<16x1xf32>
    %cst_15 = arith.constant dense<0.000000e+00> : vector<16xf32>
    %23 = vector.multi_reduction <add>, %21, %cst_15 [1] : vector<16x16xf32> to vector<16xf32>
    %24 = vector.shape_cast %23 : vector<16xf32> to vector<16x1xf32>
    %25 = arith.addf %22, %24 : vector<16x1xf32>
    %c0_16 = arith.constant 0 : index
    %c0_17 = arith.constant 0 : index
    %26 = vector.load %arg9[%c0_16, %c0_17] : memref<16x1xf32, #tpu.memory_space<vmem>>, vector<16x1xf32>
    tpu.vector_store %arg9[%c0_16, %c0_17], %25 {strides = array<i32>} : memref<16x1xf32, #tpu.memory_space<vmem>>, vector<16x1xf32>,
    %c0_18 = arith.constant 0 : index
    %c0_19 = arith.constant 0 : index
    %27 = vector.load %arg8[%c0_18, %c0_19] : memref<16x1xf32, #tpu.memory_space<vmem>>, vector<16x1xf32>
    tpu.vector_store %arg8[%c0_18, %c0_19], %16 {strides = array<i32>} : memref<16x1xf32, #tpu.memory_space<vmem>>, vector<16x1xf32>,
    %c0_20 = arith.constant 0 : index
    %c0_21 = arith.constant 0 : index
    %28 = vector.load %arg7[%c0_20, %c0_21] : memref<16x32xf32, #tpu.memory_space<vmem>>, vector<16x32xf32>
    %29 = vector.broadcast %18 : vector<16x1xf32> to vector<16x32xf32>
    %30 = arith.mulf %29, %28 : vector<16x32xf32>
    %31 = arith.truncf %21 : vector<16x16xf32> to vector<16x16xbf16>
    %cst_22 = arith.constant dense<0.000000e+00> : vector<16x32xf32>
    %32 = tpu.matmul %31, %8, %cst_22 {dimension_numbers = #tpu.dot_dimension_numbers<[1], [0], [0], [1], [0, 0, 1, 1], [], []>} : vector<16x16xbf16>, vector<16x32xbf16>, vector<16x32xf32> -> vector<16x32xf32>
    %33 = arith.addf %30, %32 : vector<16x32xf32>
    %c0_23 = arith.constant 0 : index
    %c0_24 = arith.constant 0 : index
    %34 = vector.load %arg7[%c0_23, %c0_24] : memref<16x32xf32, #tpu.memory_space<vmem>>, vector<16x32xf32>
    tpu.vector_store %arg7[%c0_23, %c0_24], %33 {strides = array<i32>} : memref<16x32xf32, #tpu.memory_space<vmem>>, vector<16x32xf32>,
    %c0_i32_25 = arith.constant 0 : i32
    %35 = arith.cmpi eq, %arg2, %c0_i32_25 : i32
    %36 = arith.extui %35 : i1 to i32
    %c0_i32_26 = arith.constant 0 : i32
    %37 = arith.cmpi ne, %36, %c0_i32_26 : i32
    scf.if %37 {
      %c0_27 = arith.constant 0 : index
      %c0_28 = arith.constant 0 : index
      %38 = vector.load %arg9[%c0_27, %c0_28] : memref<16x1xf32, #tpu.memory_space<vmem>>, vector<16x1xf32>
      %39 = tpu.reciprocal %38 {approx = true} : vector<16x1xf32> -> vector<16x1xf32>
      %c0_29 = arith.constant 0 : index
      %c0_30 = arith.constant 0 : index
      %40 = vector.load %arg7[%c0_29, %c0_30] : memref<16x32xf32, #tpu.memory_space<vmem>>, vector<16x32xf32>
      %41 = vector.broadcast %39 : vector<16x1xf32> to vector<16x32xf32>
      %42 = arith.mulf %40, %41 : vector<16x32xf32>
      %43 = arith.truncf %42 : vector<16x32xf32> to vector<16x32xbf16>
      %c0_31 = arith.constant 0 : index
      %c0_32 = arith.constant 0 : index
      %c0_33 = arith.constant 0 : index
      %44 = vector.load %arg6[%c0_31, %c0_32, %c0_33] : memref<1x16x32xbf16, #tpu.memory_space<vmem>>, vector<1x16x32xbf16>
      %45 = vector.shape_cast %44 : vector<1x16x32xbf16> to vector<16x32xbf16>
      %46 = vector.shape_cast %43 : vector<16x32xbf16> to vector<1x16x32xbf16>
      tpu.vector_store %arg6[%c0_31, %c0_32, %c0_33], %46 {strides = array<i32>} : memref<1x16x32xbf16, #tpu.memory_space<vmem>>, vector<1x16x32xbf16>,
    } else {
    }
    return
  }
  func.func @transform_0(%arg0: i32, %arg1: i32, %arg2: i32) -> (i32, i32, i32) {
    %c0_i32 = arith.constant 0 : i32
    %c0_i32_0 = arith.constant 0 : i32
    return %arg0, %arg1, %c0_i32 : i32, i32, i32
  }
  func.func @transform_1(%arg0: i32, %arg1: i32, %arg2: i32) -> (i32, i32, i32) {
    %c0_i32 = arith.constant 0 : i32
    %c0_i32_0 = arith.constant 0 : i32
    return %arg0, %arg2, %c0_i32 : i32, i32, i32
  }
  func.func @transform_2(%arg0: i32, %arg1: i32, %arg2: i32) -> (i32, i32, i32) {
    %c0_i32 = arith.constant 0 : i32
    %c0_i32_0 = arith.constant 0 : i32
    return %arg0, %arg2, %c0_i32 : i32, i32, i32
  }
  func.func @transform_3(%arg0: i32, %arg1: i32, %arg2: i32) -> (i32, i32, i32) {
    %c0_i32 = arith.constant 0 : i32
    %c0_i32_0 = arith.constant 0 : i32
    return %arg0, %arg1, %c0_i32 : i32, i32, i32
  }
}

module attributes {stable_mosaic.version = 11 : i64} {
  func.func @_linear_kernel(%arg0: i32, %arg1: i32, %arg2: i32, %arg3: memref<32x128xbf16, #tpu.memory_space<vmem>>, %arg4: memref<128x256xbf16, #tpu.memory_space<vmem>>, %arg5: memref<1x256xf32, #tpu.memory_space<vmem>>, %arg6: memref<1x128xf32, #tpu.memory_space<vmem>>, %arg7: memref<1x128xf32, #tpu.memory_space<vmem>>, %arg8: memref<32x256xbf16, #tpu.memory_space<vmem>>, %arg9: memref<32x256xf32, #tpu.memory_space<vmem>>) attributes {dimension_semantics = [#tpu.dimension_semantics<parallel>, #tpu.dimension_semantics<parallel>, #tpu.dimension_semantics<arbitrary>], iteration_bounds = array<i64: 1, 1, 1>, scalar_prefetch = 0 : i64, scratch_operands = 1 : i64, tpu.core_type = #tpu.core_type<tc>, window_params = [{transform_indices = @transform_0, window_bounds = array<i64: 32, 128>}, {transform_indices = @transform_1, window_bounds = array<i64: 128, 256>}, {transform_indices = @transform_2, window_bounds = array<i64: 1, 256>}, {pipeline_mode = #tpu.pipeline_mode<synchronous>, transform_indices = @transform_3, window_bounds = array<i64: 1, 128>}, {pipeline_mode = #tpu.pipeline_mode<synchronous>, transform_indices = @transform_4, window_bounds = array<i64: 1, 128>}, {transform_indices = @transform_5, window_bounds = array<i64: 32, 256>}]} {
    %c0_i32 = arith.constant 0 : i32
    %0 = arith.cmpi eq, %arg2, %c0_i32 : i32
    %1 = arith.extui %0 : i1 to i32
    %c0_i32_0 = arith.constant 0 : i32
    %2 = arith.cmpi ne, %1, %c0_i32_0 : i32
    scf.if %2 {
      %cst_19 = arith.constant 0.000000e+00 : f32
      %36 = vector.broadcast %cst_19 : f32 to vector<32x256xf32>
      %c0_20 = arith.constant 0 : index
      %c0_21 = arith.constant 0 : index
      %37 = vector.load %arg9[%c0_20, %c0_21] : memref<32x256xf32, #tpu.memory_space<vmem>>, vector<32x256xf32>
      tpu.vector_store %arg9[%c0_20, %c0_21], %36 {strides = array<i32>} : memref<32x256xf32, #tpu.memory_space<vmem>>, vector<32x256xf32>,
    } else {
    }
    %c0 = arith.constant 0 : index
    %c0_1 = arith.constant 0 : index
    %3 = vector.load %arg3[%c0, %c0_1] : memref<32x128xbf16, #tpu.memory_space<vmem>>, vector<32x128xbf16>
    %4 = arith.extf %3 : vector<32x128xbf16> to vector<32x128xf32>
    %cst = arith.constant dense<0.000000e+00> : vector<32xf32>
    %5 = vector.multi_reduction <add>, %4, %cst [1] : vector<32x128xf32> to vector<32xf32>
    %6 = vector.shape_cast %5 : vector<32xf32> to vector<32x1xf32>
    %cst_2 = arith.constant 1.280000e+02 : f32
    %7 = vector.broadcast %cst_2 : f32 to vector<32x1xf32>
    %8 = arith.divf %6, %7 : vector<32x1xf32>
    %9 = vector.broadcast %8 : vector<32x1xf32> to vector<32x128xf32>
    %10 = arith.subf %4, %9 : vector<32x128xf32>
    %11 = arith.mulf %10, %10 : vector<32x128xf32>
    %cst_3 = arith.constant dense<0.000000e+00> : vector<32xf32>
    %12 = vector.multi_reduction <add>, %11, %cst_3 [1] : vector<32x128xf32> to vector<32xf32>
    %13 = vector.shape_cast %12 : vector<32xf32> to vector<32x1xf32>
    %cst_4 = arith.constant 1.280000e+02 : f32
    %14 = vector.broadcast %cst_4 : f32 to vector<32x1xf32>
    %15 = arith.divf %13, %14 : vector<32x1xf32>
    %cst_5 = arith.constant 9.99999997E-7 : f32
    %16 = vector.broadcast %cst_5 : f32 to vector<32x1xf32>
    %17 = arith.addf %15, %16 : vector<32x1xf32>
    %18 = math.rsqrt %17 : vector<32x1xf32>
    %19 = vector.broadcast %18 : vector<32x1xf32> to vector<32x128xf32>
    %20 = arith.mulf %10, %19 : vector<32x128xf32>
    %c0_6 = arith.constant 0 : index
    %c0_7 = arith.constant 0 : index
    %21 = vector.load %arg6[%c0_6, %c0_7] : memref<1x128xf32, #tpu.memory_space<vmem>>, vector<1x128xf32>
    %22 = vector.broadcast %21 : vector<1x128xf32> to vector<32x128xf32>
    %23 = arith.mulf %20, %22 : vector<32x128xf32>
    %c0_8 = arith.constant 0 : index
    %c0_9 = arith.constant 0 : index
    %24 = vector.load %arg7[%c0_8, %c0_9] : memref<1x128xf32, #tpu.memory_space<vmem>>, vector<1x128xf32>
    %25 = vector.broadcast %24 : vector<1x128xf32> to vector<32x128xf32>
    %26 = arith.addf %23, %25 : vector<32x128xf32>
    %27 = arith.truncf %26 : vector<32x128xf32> to vector<32x128xbf16>
    %c0_10 = arith.constant 0 : index
    %c0_11 = arith.constant 0 : index
    %28 = vector.load %arg9[%c0_10, %c0_11] : memref<32x256xf32, #tpu.memory_space<vmem>>, vector<32x256xf32>
    %c0_12 = arith.constant 0 : index
    %c0_13 = arith.constant 0 : index
    %29 = vector.load %arg4[%c0_12, %c0_13] : memref<128x256xbf16, #tpu.memory_space<vmem>>, vector<128x256xbf16>
    %cst_14 = arith.constant dense<0.000000e+00> : vector<32x256xf32>
    %30 = tpu.matmul %27, %29, %cst_14 {dimension_numbers = #tpu.dot_dimension_numbers<[1], [0], [0], [1], [0, 0, 1, 1], [], []>} : vector<32x128xbf16>, vector<128x256xbf16>, vector<32x256xf32> -> vector<32x256xf32>
    %31 = arith.addf %28, %30 : vector<32x256xf32>
    %c0_15 = arith.constant 0 : index
    %c0_16 = arith.constant 0 : index
    %32 = vector.load %arg9[%c0_15, %c0_16] : memref<32x256xf32, #tpu.memory_space<vmem>>, vector<32x256xf32>
    tpu.vector_store %arg9[%c0_15, %c0_16], %31 {strides = array<i32>} : memref<32x256xf32, #tpu.memory_space<vmem>>, vector<32x256xf32>,
    %c0_i32_17 = arith.constant 0 : i32
    %33 = arith.cmpi eq, %arg2, %c0_i32_17 : i32
    %34 = arith.extui %33 : i1 to i32
    %c0_i32_18 = arith.constant 0 : i32
    %35 = arith.cmpi ne, %34, %c0_i32_18 : i32
    scf.if %35 {
      %c0_19 = arith.constant 0 : index
      %c0_20 = arith.constant 0 : index
      %36 = vector.load %arg9[%c0_19, %c0_20] : memref<32x256xf32, #tpu.memory_space<vmem>>, vector<32x256xf32>
      %c0_21 = arith.constant 0 : index
      %c0_22 = arith.constant 0 : index
      %37 = vector.load %arg5[%c0_21, %c0_22] : memref<1x256xf32, #tpu.memory_space<vmem>>, vector<1x256xf32>
      %38 = vector.broadcast %37 : vector<1x256xf32> to vector<32x256xf32>
      %39 = arith.addf %36, %38 : vector<32x256xf32>
      %cst_23 = arith.constant 5.000000e-01 : f32
      %40 = vector.broadcast %cst_23 : f32 to vector<32x256xf32>
      %41 = arith.mulf %40, %39 : vector<32x256xf32>
      %cst_24 = arith.constant 4.471500e-02 : f32
      %42 = vector.broadcast %cst_24 : f32 to vector<32x256xf32>
      %43 = arith.mulf %42, %39 : vector<32x256xf32>
      %44 = arith.mulf %43, %39 : vector<32x256xf32>
      %45 = arith.mulf %44, %39 : vector<32x256xf32>
      %46 = arith.addf %39, %45 : vector<32x256xf32>
      %cst_25 = arith.constant 0.797884583 : f32
      %47 = vector.broadcast %cst_25 : f32 to vector<32x256xf32>
      %48 = arith.mulf %47, %46 : vector<32x256xf32>
      %49 = math.tanh %48 : vector<32x256xf32>
      %cst_26 = arith.constant 1.000000e+00 : f32
      %50 = vector.broadcast %cst_26 : f32 to vector<32x256xf32>
      %51 = arith.addf %50, %49 : vector<32x256xf32>
      %52 = arith.mulf %41, %51 : vector<32x256xf32>
      %53 = arith.truncf %52 : vector<32x256xf32> to vector<32x256xbf16>
      %c0_27 = arith.constant 0 : index
      %c0_28 = arith.constant 0 : index
      %54 = vector.load %arg8[%c0_27, %c0_28] : memref<32x256xbf16, #tpu.memory_space<vmem>>, vector<32x256xbf16>
      tpu.vector_store %arg8[%c0_27, %c0_28], %53 {strides = array<i32>} : memref<32x256xbf16, #tpu.memory_space<vmem>>, vector<32x256xbf16>,
    } else {
    }
    return
  }
  func.func @transform_0(%arg0: i32, %arg1: i32, %arg2: i32) -> (i32, i32) {
    %c0_i32 = arith.constant 0 : i32
    return %arg0, %arg2 : i32, i32
  }
  func.func @transform_1(%arg0: i32, %arg1: i32, %arg2: i32) -> (i32, i32) {
    %c0_i32 = arith.constant 0 : i32
    return %arg2, %arg1 : i32, i32
  }
  func.func @transform_2(%arg0: i32, %arg1: i32, %arg2: i32) -> (i32, i32) {
    %c0_i32 = arith.constant 0 : i32
    %c0_i32_0 = arith.constant 0 : i32
    return %c0_i32, %arg1 : i32, i32
  }
  func.func @transform_3(%arg0: i32, %arg1: i32, %arg2: i32) -> (i32, i32) {
    %c0_i32 = arith.constant 0 : i32
    %c0_i32_0 = arith.constant 0 : i32
    %c0_i32_1 = arith.constant 0 : i32
    return %c0_i32, %c0_i32_0 : i32, i32
  }
  func.func @transform_4(%arg0: i32, %arg1: i32, %arg2: i32) -> (i32, i32) {
    %c0_i32 = arith.constant 0 : i32
    %c0_i32_0 = arith.constant 0 : i32
    %c0_i32_1 = arith.constant 0 : i32
    return %c0_i32, %c0_i32_0 : i32, i32
  }
  func.func @transform_5(%arg0: i32, %arg1: i32, %arg2: i32) -> (i32, i32) {
    %c0_i32 = arith.constant 0 : i32
    return %arg0, %arg1 : i32, i32
  }
}

module attributes {stable_mosaic.version = 11 : i64} {
  func.func @_linear_kernel(%arg0: i32, %arg1: i32, %arg2: i32, %arg3: memref<32x256xbf16, #tpu.memory_space<vmem>>, %arg4: memref<256x128xbf16, #tpu.memory_space<vmem>>, %arg5: memref<1x128xf32, #tpu.memory_space<vmem>>, %arg6: memref<32x128xbf16, #tpu.memory_space<vmem>>, %arg7: memref<32x128xbf16, #tpu.memory_space<vmem>>, %arg8: memref<32x128xf32, #tpu.memory_space<vmem>>) attributes {dimension_semantics = [#tpu.dimension_semantics<parallel>, #tpu.dimension_semantics<parallel>, #tpu.dimension_semantics<arbitrary>], iteration_bounds = array<i64: 1, 1, 1>, scalar_prefetch = 0 : i64, scratch_operands = 1 : i64, tpu.core_type = #tpu.core_type<tc>, window_params = [{transform_indices = @transform_0, window_bounds = array<i64: 32, 256>}, {transform_indices = @transform_1, window_bounds = array<i64: 256, 128>}, {transform_indices = @transform_2, window_bounds = array<i64: 1, 128>}, {transform_indices = @transform_3, window_bounds = array<i64: 32, 128>}, {transform_indices = @transform_4, window_bounds = array<i64: 32, 128>}]} {
    %c0_i32 = arith.constant 0 : i32
    %0 = arith.cmpi eq, %arg2, %c0_i32 : i32
    %1 = arith.extui %0 : i1 to i32
    %c0_i32_0 = arith.constant 0 : i32
    %2 = arith.cmpi ne, %1, %c0_i32_0 : i32
    scf.if %2 {
      %cst_10 = arith.constant 0.000000e+00 : f32
      %12 = vector.broadcast %cst_10 : f32 to vector<32x128xf32>
      %c0_11 = arith.constant 0 : index
      %c0_12 = arith.constant 0 : index
      %13 = vector.load %arg8[%c0_11, %c0_12] : memref<32x128xf32, #tpu.memory_space<vmem>>, vector<32x128xf32>
      tpu.vector_store %arg8[%c0_11, %c0_12], %12 {strides = array<i32>} : memref<32x128xf32, #tpu.memory_space<vmem>>, vector<32x128xf32>,
    } else {
    }
    %c0 = arith.constant 0 : index
    %c0_1 = arith.constant 0 : index
    %3 = vector.load %arg3[%c0, %c0_1] : memref<32x256xbf16, #tpu.memory_space<vmem>>, vector<32x256xbf16>
    %c0_2 = arith.constant 0 : index
    %c0_3 = arith.constant 0 : index
    %4 = vector.load %arg8[%c0_2, %c0_3] : memref<32x128xf32, #tpu.memory_space<vmem>>, vector<32x128xf32>
    %c0_4 = arith.constant 0 : index
    %c0_5 = arith.constant 0 : index
    %5 = vector.load %arg4[%c0_4, %c0_5] : memref<256x128xbf16, #tpu.memory_space<vmem>>, vector<256x128xbf16>
    %cst = arith.constant dense<0.000000e+00> : vector<32x128xf32>
    %6 = tpu.matmul %3, %5, %cst {dimension_numbers = #tpu.dot_dimension_numbers<[1], [0], [0], [1], [0, 0, 1, 1], [], []>} : vector<32x256xbf16>, vector<256x128xbf16>, vector<32x128xf32> -> vector<32x128xf32>
    %7 = arith.addf %4, %6 : vector<32x128xf32>
    %c0_6 = arith.constant 0 : index
    %c0_7 = arith.constant 0 : index
    %8 = vector.load %arg8[%c0_6, %c0_7] : memref<32x128xf32, #tpu.memory_space<vmem>>, vector<32x128xf32>
    tpu.vector_store %arg8[%c0_6, %c0_7], %7 {strides = array<i32>} : memref<32x128xf32, #tpu.memory_space<vmem>>, vector<32x128xf32>,
    %c0_i32_8 = arith.constant 0 : i32
    %9 = arith.cmpi eq, %arg2, %c0_i32_8 : i32
    %10 = arith.extui %9 : i1 to i32
    %c0_i32_9 = arith.constant 0 : i32
    %11 = arith.cmpi ne, %10, %c0_i32_9 : i32
    scf.if %11 {
      %c0_10 = arith.constant 0 : index
      %c0_11 = arith.constant 0 : index
      %12 = vector.load %arg8[%c0_10, %c0_11] : memref<32x128xf32, #tpu.memory_space<vmem>>, vector<32x128xf32>
      %c0_12 = arith.constant 0 : index
      %c0_13 = arith.constant 0 : index
      %13 = vector.load %arg5[%c0_12, %c0_13] : memref<1x128xf32, #tpu.memory_space<vmem>>, vector<1x128xf32>
      %14 = vector.broadcast %13 : vector<1x128xf32> to vector<32x128xf32>
      %15 = arith.addf %12, %14 : vector<32x128xf32>
      %c0_14 = arith.constant 0 : index
      %c0_15 = arith.constant 0 : index
      %16 = vector.load %arg6[%c0_14, %c0_15] : memref<32x128xbf16, #tpu.memory_space<vmem>>, vector<32x128xbf16>
      %17 = arith.extf %16 : vector<32x128xbf16> to vector<32x128xf32>
      %18 = arith.addf %15, %17 : vector<32x128xf32>
      %19 = arith.truncf %18 : vector<32x128xf32> to vector<32x128xbf16>
      %c0_16 = arith.constant 0 : index
      %c0_17 = arith.constant 0 : index
      %20 = vector.load %arg7[%c0_16, %c0_17] : memref<32x128xbf16, #tpu.memory_space<vmem>>, vector<32x128xbf16>
      tpu.vector_store %arg7[%c0_16, %c0_17], %19 {strides = array<i32>} : memref<32x128xbf16, #tpu.memory_space<vmem>>, vector<32x128xbf16>,
    } else {
    }
    return
  }
  func.func @transform_0(%arg0: i32, %arg1: i32, %arg2: i32) -> (i32, i32) {
    %c0_i32 = arith.constant 0 : i32
    return %arg0, %arg2 : i32, i32
  }
  func.func @transform_1(%arg0: i32, %arg1: i32, %arg2: i32) -> (i32, i32) {
    %c0_i32 = arith.constant 0 : i32
    return %arg2, %arg1 : i32, i32
  }
  func.func @transform_2(%arg0: i32, %arg1: i32, %arg2: i32) -> (i32, i32) {
    %c0_i32 = arith.constant 0 : i32
    %c0_i32_0 = arith.constant 0 : i32
    return %c0_i32, %arg1 : i32, i32
  }
  func.func @transform_3(%arg0: i32, %arg1: i32, %arg2: i32) -> (i32, i32) {
    %c0_i32 = arith.constant 0 : i32
    return %arg0, %arg1 : i32, i32
  }
  func.func @transform_4(%arg0: i32, %arg1: i32, %arg2: i32) -> (i32, i32) {
    %c0_i32 = arith.constant 0 : i32
    return %arg0, %arg1 : i32, i32
  }
}

</mosaic_0001>

<bundles_post_ra>
// kernel: encoder_layer_forward.7
= control target key start
LH: loop header
LB: loop body
LE: loop exit
PB: predicated region body
PF: predicated region fallthrough
CT: control target
= control target key end

     0   :  { %s370_s1 = inlined_call_operand.vmem [shape: bf16[128,128], index: 1, kind: input, shape index: {}]   ;;  %s371_s0 = inlined_call_operand.vmem [shape: bf16[32,128], index: 0, kind: input, shape index: {}]   ;;  %s372_s2 = inlined_call_operand.vmem [shape: f32[1,128], index: 2, kind: input, shape index: {}]   ;;  %s373_s3 = inlined_call_operand.vmem [shape: bf16[32,128], index: 3, kind: input, shape index: {}]   ;;  %s374_s4 = inlined_call_operand.vmem [shape: bf16[32,128], index: 4, kind: output, shape index: {}]  }
   0x1   :  { %v290_v0 = vld [vmem:[%s370_s1 + $0x38] sm:$0xff]   ;;  %v291_v1 = vld [vmem:[%s370_s1 + $0x30] sm:$0xff]   ;;  %v292_v2 = vld [vmem:[%s370_s1 + $0x28] sm:$0xff]  }
   0x2   :  { %270 = vmatprep.subr.bf16.mxu0 %v290_v0  ;;  %v293_v3 = vld [vmem:[%s370_s1 + $0x20] sm:$0xff]   ;;  %v294_v5 = vld [vmem:[%s370_s1 + $0x18] sm:$0xff]   ;;  %v295_v6 = vld [vmem:[%s370_s1 + $0x10] sm:$0xff]  }
   0x3   :  { %271 = vmatpush3.bf16.msra.mxu0 %v290_v0  ;;  %v298_v4 = vld [vmem:[%s371_s0] sm:$0xff]   ;;  %v296_v7 = vld [vmem:[%s370_s1 + $0x8] sm:$0xff]  }
   0x4   :  { %272 = vmatprep.subr.bf16.mxu0 %v291_v1  ;;  %286 = vmatprep.mubr.bf16.mxu0 %v298_v4  ;;  %v297_v8 = vld [vmem:[%s370_s1] sm:$0xff]   ;;  %v299_v9 = vld [vmem:[%s371_s0 + $0x8] sm:$0xff]  }
   0x5   :  { %v231_v11 = vld [vmem:[%s372_s2] ss:$0 sm:$0xff]  ;;  %v258_v12 = vld [vmem:[%s373_s3 + $0x8] sm:$0xff]  }
   0x6   :  { %v241_v14 = vld [vmem:[%s373_s3] sm:$0xff]   ;;  %v246_v16 = vunpack.c.l.bf16 %v258_v12  ;;  %v247_v17 = vunpack.c.h.bf16 %v258_v12 }
   0x7   :  { %273 = vmatpush3.bf16.msra.mxu0 %v291_v1  ;;  %v242_v20 = vunpack.c.l.bf16 %v241_v14  ;;  %v243_v22 = vunpack.c.h.bf16 %v241_v14 }
   0x8   :  { %274 = vmatprep.subr.bf16.mxu0 %v292_v2 }
   0xb   :  { %275 = vmatpush3.bf16.msra.mxu0 %v292_v2 }
   0xc   :  { %276 = vmatprep.subr.bf16.mxu0 %v293_v3 }
   0xf   :  { %277 = vmatpush3.bf16.msra.mxu0 %v293_v3 }
  0x10   :  { %278 = vmatprep.subr.bf16.mxu0 %v294_v5 }
  0x13   :  { %279 = vmatpush3.bf16.msra.mxu0 %v294_v5 }
  0x14   :  { %280 = vmatprep.subr.bf16.mxu0 %v295_v6 }
  0x17   :  { %281 = vmatpush3.bf16.msra.mxu0 %v295_v6 }
  0x18   :  { %282 = vmatprep.subr.bf16.mxu0 %v296_v7 }
  0x1b   :  { %283 = vmatpush3.bf16.msra.mxu0 %v296_v7 }
  0x1c   :  { %284 = vmatprep.subr.bf16.mxu0 %v297_v8 }
  0x1f   :  { %285 = vmatpush3.bf16.msra.mxu0 %v297_v8 }
  0x22   :  { %287 = vmatmul.mubr.bf16.vlgmr.msra.gmra.mxu0 %v299_v9 }
  0xe2   :  { %v288_v10 = vpop.f32.mrf.mxu0 }
  0xe3   :  { %v183_v15 = vadd.f32 %v288_v10, %v231_v11 }
  0xe4   :  { %v144_v13 = vpop.f32.mrf.mxu0 }
  0xe5   :  { %v181_v19 = vadd.f32 %v231_v11, %v144_v13  ;;  %v195_v24 = vadd.f32 %v246_v16, %v183_v15 }
  0xe6   :  { %v289_v18 = vpop.f32.mrf.mxu0 }
  0xe7   :  { %v184_v21 = vadd.f32 %v289_v18, %v231_v11  ;;  %v193_v27 = vadd.f32 %v242_v20, %v181_v19 }
  0xe8   :  { %v147_v23 = vpop.f32.mrf.mxu0 }
  0xe9   :  { %v196_v25 = vadd.f32 %v247_v17, %v184_v21  ;;  %v182_v26 = vadd.f32 %v231_v11, %v147_v23 }
  0xeb   :  { %v256_v28 = vpack.c.bf16 %v196_v25, %v195_v24  ;;  %v194_v29 = vadd.f32 %v243_v22, %v182_v26 }
  0xed   :  { %259 = vst [vmem:[%s374_s4 + $0x8] sm:$0xff] %v256_v28   ;;  %v251_v30 = vpack.c.bf16 %v194_v29, %v193_v27 }
  0xef   :  { %252 = vst [vmem:[%s374_s4] sm:$0xff] %v251_v30  }

// kernel: encoder_layer_forward.5
= control target key start
LH: loop header
LB: loop body
LE: loop exit
PB: predicated region body
PF: predicated region fallthrough
CT: control target
= control target key end

     0   :  { %10 = vsyncpa [#allocation4], 0  ;;  %s670_s18 = smov [#allocation3]   ;;  %s766_s0 = inlined_call_operand.vmem [shape: bf16[32,128], index: 0, kind: input, shape index: {}]   ;;  %s767_s1 = inlined_call_operand.hbm [shape: bf16[128,384], index: 1, kind: input, shape index: {}]   ;;  %s768_s2 = inlined_call_operand.vmem [shape: f32[1,384], index: 2, kind: input, shape index: {}]   ;;  %s769_s3 = inlined_call_operand.vmem [shape: f32[1,128], index: 3, kind: input, shape index: {}]   ;;  %s770_s4 = inlined_call_operand.vmem [shape: f32[1,128], index: 4, kind: input, shape index: {}]   ;;  %s771_s5 = inlined_call_operand.vmem [shape: bf16[32,384], index: 5, kind: output, shape index: {}]  }
   0x1   :  { %s18_s19 = sshll.u32 %s670_s18, 4  ;;  %s19_s19 = int_to_ptr.vmem [resolvable:$true] %s18_s19 }
   0x2   :  { %s656_s20 = scalar_lea.vmem %s19_s19, 3072  ;;  %p661_p1 = scmp.lt.s32.totalorder %s19_s19, %s19_s19 }
   0x3   :  { %p657_p0 = scmp.ne.s32.totalorder %s19_s19, %s656_s20  ;;  %p662_p2 = scmp.lt.s32.totalorder %s656_s20, %s656_s20 }
   0x5   :  { %p663_p3 = por %p662_p2, %p661_p1 }
   0x7   :  { %p664_p4 = pnand %p663_p3, %p657_p0 }
   0x9   :  { %667 = shalt.err (!%p664_p4)
}
   0xa   :  { %s671_s21 = smov 192   ;;  %s672_s22 = smov 12  }
   0xb   :  { %24 = dma.hbm_to_vmem [thread:$0]  %s767_s1, 3072, %s19_s19, [#allocation4], %s671_s21, %s671_s21, %s672_s22  }
   0xc   :  { %668 = dma.done.wait [#allocation4], 3072  }
   0xd   :  { %669 = vsyncadd [#allocation4], 4294964224  ;;  %v566_v0 = vld [vmem:[%s766_s0] sm:$0xff]   ;;  %v573_v1 = vld [vmem:[%s766_s0 + $0x8] sm:$0xff]   ;;  %v673_v41 = vmov 0  }
   0xe   :  { %v567_v2 = vunpack.c.l.bf16 %v566_v0  ;;  %v571_v3 = vunpack.c.l.bf16 %v573_v1  ;;  %v568_v4 = vunpack.c.h.bf16 %v566_v0  ;;  %v572_v5 = vunpack.c.h.bf16 %v573_v1  ;;  %v608_v6 = vld [vmem:[#allocation3 + $0xac] ss:$12 sps:$4 sm:$0xff]   ;;  %v610_v7 = vld [vmem:[#allocation3 + $0xa8] ss:$12 sps:$4 sm:$0xff]   ;;  %v613_v25 = vld [vmem:[#allocation3 + $0xb0] ss:$12 sps:$4 sm:$0xff]   ;;  %332 = vmatprep.mubr.bf16.mxu0 %v673_v41 }
   0xf   :  { %300 = vmatprep.subr.bf16.mxu0 %v608_v6  ;;  %v611_v24 = vld [vmem:[#allocation3 + $0x94] ss:$12 sps:$4 sm:$0xff]   ;;  %v614_v26 = vld [vmem:[#allocation3 + $0x90] ss:$12 sps:$4 sm:$0xff]   ;;  %584 = vmatprep.subr.bf16.mxu1 %v613_v25  ;;  %v617_v28 = vld [vmem:[#allocation3 + $0x98] ss:$12 sps:$4 sm:$0xff]  }
  0x10   :  { %59 = vadd.xlane.f32.xlu0 %v567_v2  ;;  %63 = vadd.xlane.f32.xlu1 %v571_v3  ;;  %v615_v27 = vld [vmem:[#allocation3 + $0x7c] ss:$12 sps:$4 sm:$0xff]   ;;  %v618_v29 = vld [vmem:[#allocation3 + $0x78] ss:$12 sps:$4 sm:$0xff]   ;;  %v621_v31 = vld [vmem:[#allocation3 + $0x80] ss:$12 sps:$4 sm:$0xff]  }
  0x11   :  { %301 = vmatpush1.bf16.msra.mxu0 %v610_v7  ;;  %585 = vmatpush3.bf16.msra.mxu1 %v613_v25  ;;  %v619_v30 = vld [vmem:[#allocation3 + $0x64] ss:$12 sps:$4 sm:$0xff]   ;;  %v622_v32 = vld [vmem:[#allocation3 + $0x60] ss:$12 sps:$4 sm:$0xff]   ;;  %v625_v34 = vld [vmem:[#allocation3 + $0x68] ss:$12 sps:$4 sm:$0xff]  }
  0x12   :  { %302 = vmatprep.subr.bf16.mxu0 %v611_v24  ;;  %586 = vmatprep.subr.bf16.mxu1 %v617_v28  ;;  %v623_v33 = vld [vmem:[#allocation3 + $0x4c] ss:$12 sps:$4 sm:$0xff]   ;;  %v626_v35 = vld [vmem:[#allocation3 + $0x48] ss:$12 sps:$4 sm:$0xff]   ;;  %v629_v37 = vld [vmem:[#allocation3 + $0x50] ss:$12 sps:$4 sm:$0xff]  }
  0x13   :  { %v627_v36 = vld [vmem:[#allocation3 + $0x34] ss:$12 sps:$4 sm:$0xff]   ;;  %v630_v38 = vld [vmem:[#allocation3 + $0x30] ss:$12 sps:$4 sm:$0xff]   ;;  %v633_v40 = vld [vmem:[#allocation3 + $0x38] ss:$12 sps:$4 sm:$0xff]  }
  0x14   :  { %61 = vadd.xlane.f32.xlu0 %v568_v4  ;;  %65 = vadd.xlane.f32.xlu1 %v572_v5  ;;  %v631_v39 = vld [vmem:[#allocation3 + $0x1c] ss:$12 sps:$4 sm:$0xff]   ;;  %v634_v42 = vld [vmem:[#allocation3 + $0x18] ss:$12 sps:$4 sm:$0xff]   ;;  %v637_v44 = vld [vmem:[#allocation3 + $0x20] ss:$12 sps:$4 sm:$0xff]  }
  0x15   :  { %303 = vmatpush1.bf16.msra.mxu0 %v614_v26  ;;  %587 = vmatpush3.bf16.msra.mxu1 %v617_v28  ;;  %v635_v43 = vld [vmem:[#allocation3 + $0x4] ss:$12 sps:$4 sm:$0xff]   ;;  %v638_v45 = vld [vmem:[#allocation3] ss:$12 sps:$4 sm:$0xff]   ;;  %v639_v46 = vld [vmem:[#allocation3 + $0x8] ss:$12 sps:$4 sm:$0xff]  }
  0x16   :  { %304 = vmatprep.subr.bf16.mxu0 %v615_v27  ;;  %588 = vmatprep.subr.bf16.mxu1 %v621_v31  ;;  %v523_v61 = vld [vmem:[%s769_s3] ss:$0 sm:$0xff] }
  0x19   :  { %305 = vmatpush1.bf16.msra.mxu0 %v618_v29  ;;  %589 = vmatpush3.bf16.msra.mxu1 %v621_v31 }
  0x1a   :  { %306 = vmatprep.subr.bf16.mxu0 %v619_v30  ;;  %590 = vmatprep.subr.bf16.mxu1 %v625_v34 }
  0x1d   :  { %307 = vmatpush1.bf16.msra.mxu0 %v622_v32  ;;  %591 = vmatpush3.bf16.msra.mxu1 %v625_v34 }
  0x1e   :  { %308 = vmatprep.subr.bf16.mxu0 %v623_v33  ;;  %592 = vmatprep.subr.bf16.mxu1 %v629_v37 }
  0x21   :  { %309 = vmatpush1.bf16.msra.mxu0 %v626_v35  ;;  %593 = vmatpush3.bf16.msra.mxu1 %v629_v37 }
  0x22   :  { %310 = vmatprep.subr.bf16.mxu0 %v627_v36  ;;  %594 = vmatprep.subr.bf16.mxu1 %v633_v40 }
  0x25   :  { %311 = vmatpush1.bf16.msra.mxu0 %v630_v38  ;;  %595 = vmatpush3.bf16.msra.mxu1 %v633_v40 }
  0x26   :  { %312 = vmatprep.subr.bf16.mxu0 %v631_v39  ;;  %596 = vmatprep.subr.bf16.mxu1 %v637_v44 }
  0x29   :  { %313 = vmatpush1.bf16.msra.mxu0 %v634_v42  ;;  %597 = vmatpush3.bf16.msra.mxu1 %v637_v44 }
  0x2a   :  { %314 = vmatprep.subr.bf16.mxu0 %v635_v43  ;;  %598 = vmatprep.subr.bf16.mxu1 %v639_v46 }
  0x2d   :  { %315 = vmatpush1.bf16.msra.mxu0 %v638_v45  ;;  %599 = vmatpush3.bf16.msra.mxu1 %v639_v46 }
  0x99   :  { %v60_v8 = vpop.xlane.xlu0 %59  ;;  %v64_v9 = vpop.xlane.xlu1 %63 }
  0x9a   :  { %v68_v10 = vmul.f32 0.0078125, %v60_v8  ;;  %v70_v11 = vmul.f32 0.0078125, %v64_v9 }
  0x9c   :  { %v713_v12 = vsub.f32 %v567_v2, %v68_v10  ;;  %v715_v13 = vsub.f32 %v571_v3, %v70_v11  ;;  %v524_v2 = vld [vmem:[%s770_s4] ss:$0 sm:$0xff] }
  0x9d   :  { %v62_v14 = vpop.xlane.xlu0 %61  ;;  %v66_v15 = vpop.xlane.xlu1 %65 }
  0x9e   :  { %v69_v16 = vmul.f32 0.0078125, %v62_v14  ;;  %v76_v17 = vmul.f32 %v713_v12, %v713_v12  ;;  %v71_v18 = vmul.f32 0.0078125, %v66_v15  ;;  %v78_v21 = vmul.f32 %v715_v13, %v715_v13 }
  0xa0   :  { %v719_v19 = vsub.f32 %v568_v4, %v69_v16  ;;  %80 = vadd.xlane.f32.xlu0 %v76_v17  ;;  %v721_v20 = vsub.f32 %v572_v5, %v71_v18  ;;  %v443_v16 = vlaneseq }
  0xa2   :  { %v77_v22 = vmul.f32 %v719_v19, %v719_v19  ;;  %v79_v23 = vmul.f32 %v721_v20, %v721_v20  ;;  %v444_v17 = vshrl.u32 %v443_v16, 7 }
  0xa4   :  { %84 = vadd.xlane.f32.xlu0 %v78_v21  ;;  %82 = vadd.xlane.f32.xlu1 %v77_v22  ;;  %v449_v18 = vsub.s32 1, %v444_v17 }
  0xa8   :  { %86 = vadd.xlane.f32.xlu1 %v79_v23 }
 0x129   :  { %v81_v47 = vpop.xlane.xlu0 %80 }
 0x12a   :  { %v88_v48 = vmul.f32 0.0078125, %v81_v47 }
 0x12c   :  { %v92_v49 = vadd.f32 1e-06, %v88_v48 }
 0x12d   :  { %v83_v50 = vpop.xlane.xlu1 %82  ;;  %v85_v51 = vpop.xlane.xlu0 %84 }
 0x12e   :  { %640 = vrsqrt.f32 %v92_v49  ;;  %v89_v52 = vmul.f32 0.0078125, %v83_v50  ;;  %v90_v53 = vmul.f32 0.0078125, %v85_v51 }
 0x130   :  { %v93_v54 = vadd.f32 1e-06, %v89_v52  ;;  %v94_v55 = vadd.f32 1e-06, %v90_v53 }
 0x131   :  { %v87_v56 = vpop.xlane.xlu1 %86 }
 0x132   :  { %642 = vrsqrt.f32 %v93_v54  ;;  %v91_v57 = vmul.f32 0.0078125, %v87_v56 }
 0x133   :  { %644 = vrsqrt.f32 %v94_v55 }
 0x134   :  { %v95_v58 = vadd.f32 1e-06, %v91_v57 }
 0x136   :  { %646 = vrsqrt.f32 %v95_v58 }
 0x13b   :  { %v641_v59 = vpop.eup %640 }
 0x13c   :  { %v100_v60 = vmul.f32 %v641_v59, %v713_v12 }
 0x13e   :  { %v111_v1 = vmul.f32 %v523_v61, %v100_v60 }
 0x13f   :  { %v643_v62 = vpop.eup %642 }
 0x140   :  { %v645_v63 = vpop.eup %644  ;;  %v101_v0 = vmul.f32 %v643_v62, %v719_v19  ;;  %v122_v6 = vadd.f32 %v524_v2, %v111_v1  ;;  %v441_v19 = vld [vmem:[%s768_s2] sm:$0x7] }
 0x141   :  { %v102_v3 = vmul.f32 %v645_v63, %v715_v13  ;;  %v445_v13 = vsub.s32 0, %v444_v17  ;;  %v450_v22 = vrot.slane %v441_v19, %v449_v18 }
 0x142   :  { %v112_v4 = vmul.f32 %v523_v61, %v101_v0 }
 0x143   :  { %v647_v5 = vpop.eup %646  ;;  %v113_v9 = vmul.f32 %v523_v61, %v102_v3  ;;  %v446_v21 = vrot.slane %v441_v19, %v445_v13 }
 0x144   :  { %v123_v7 = vadd.f32 %v524_v2, %v112_v4  ;;  %v103_v8 = vmul.f32 %v647_v5, %v721_v20  ;;  %v453_v20 = vsub.s32 2, %v444_v17 }
 0x145   :  { %v124_v12 = vadd.f32 %v524_v2, %v113_v9 }
 0x146   :  { %v126_v10 = vpack.c.bf16 %v123_v7, %v122_v6  ;;  %v114_v11 = vmul.f32 %v523_v61, %v103_v8  ;;  %v454_v24 = vrot.slane %v441_v19, %v453_v20 }
 0x148   :  { %333 = vmatmul.mubr.bf16.vlgmr.msra.gmra.mxu0 %v126_v10  ;;  %600 = vmatprep.mubr.bf16.mxu1 %v126_v10  ;;  %v125_v14 = vadd.f32 %v524_v2, %v114_v11 }
 0x149   :  { %342 = vmatprep.mubr.bf16.mxu0 %v673_v41 }
 0x14a   :  { %v127_v15 = vpack.c.bf16 %v125_v14, %v124_v12 }
 0x14c   :  { %601 = vmatmul.mubr.bf16.vlgmr.msra.gmra.mxu1 %v127_v15 }
 0x150   :  { %343 = vmatmul.mubr.bf16.gmra.mxu0 %v127_v15 }
 0x208   :  { %v334_v23 = vpop.f32.mrf.mxu0 }
 0x209   :  { %v458_v26 = vadd.f32 %v446_v21, %v334_v23 }
 0x20a   :  { %v336_v25 = vpop.f32.mrf.mxu0 }
 0x20b   :  { %v459_v27 = vadd.f32 %v450_v22, %v336_v25 }
 0x20c   :  { %v338_v28 = vpop.f32.mrf.mxu0  ;;  %v602_v29 = vpop.f32.mrf.mxu1 }
 0x20d   :  { %v557_v30 = vpack.c.bf16 %v459_v27, %v458_v26  ;;  %v466_v31 = vadd.f32 %v602_v29, %v454_v24  ;;  %v461_v34 = vadd.f32 %v446_v21, %v338_v28 }
 0x20e   :  { %v340_v32 = vpop.f32.mrf.mxu0  ;;  %v387_v33 = vpop.f32.mrf.mxu1 }
 0x20f   :  { %510 = vst [vmem:[%s771_s5] sm:$0xff] %v557_v30  ;;  %v562_v35 = vpack.c.bf16 %v466_v31, %v466_v31  ;;  %v462_v36 = vadd.f32 %v450_v22, %v340_v32  ;;  %v460_v37 = vadd.f32 %v454_v24, %v387_v33 }
 0x210   :  { %v344_v38 = vpop.f32.mrf.mxu0  ;;  %v603_v39 = vpop.f32.mrf.mxu1 }
 0x211   :  { %515 = vst [vmem:[%s771_s5 + $0x20] sm:$0xf] %v562_v35  ;;  %v559_v40 = vpack.c.bf16 %v462_v36, %v461_v34  ;;  %v558_v41 = vpack.c.bf16 %v460_v37, %v460_v37  ;;  %v469_v42 = vadd.f32 %v603_v39, %v454_v24  ;;  %v464_v45 = vadd.f32 %v446_v21, %v344_v38 }
 0x212   :  { %v346_v43 = vpop.f32.mrf.mxu0  ;;  %v390_v44 = vpop.f32.mrf.mxu1 }
 0x213   :  { %512 = vst [vmem:[%s771_s5 + $0xc] sm:$0xff] %v559_v40  ;;  %511 = vst [vmem:[%s771_s5 + $0x8] sm:$0xf] %v558_v41  ;;  %v564_v46 = vpack.c.bf16 %v469_v42, %v469_v42  ;;  %v465_v47 = vadd.f32 %v450_v22, %v346_v43  ;;  %v463_v48 = vadd.f32 %v454_v24, %v390_v44 }
 0x214   :  { %v348_v49 = vpop.f32.mrf.mxu0 }
 0x215   :  { %517 = vst [vmem:[%s771_s5 + $0x2c] sm:$0xf] %v564_v46  ;;  %v561_v50 = vpack.c.bf16 %v465_v47, %v464_v45  ;;  %v560_v51 = vpack.c.bf16 %v463_v48, %v463_v48  ;;  %v467_v53 = vadd.f32 %v446_v21, %v348_v49 }
 0x216   :  { %v350_v52 = vpop.f32.mrf.mxu0 }
 0x217   :  { %514 = vst [vmem:[%s771_s5 + $0x18] sm:$0xff] %v561_v50  ;;  %513 = vst [vmem:[%s771_s5 + $0x14] sm:$0xf] %v560_v51  ;;  %v468_v54 = vadd.f32 %v450_v22, %v350_v52 }
 0x219   :  { %v563_v55 = vpack.c.bf16 %v468_v54, %v467_v53 }
 0x21b   :  { %516 = vst [vmem:[%s771_s5 + $0x24] sm:$0xff] %v563_v55 }
 0x21c   :  { %522 = vsyncpa [#allocation4], 1 }

// kernel: encoder_layer_forward.6
= control target key start
LH: loop header
LB: loop body
LE: loop exit
PB: predicated region body
PF: predicated region fallthrough
CT: control target
= control target key end

     0   :  { %s782_s12 = smov 0   ;;  %s784_s13 = smov 0   ;;  %s846_s0 = inlined_call_operand.vmem [shape: bf16[8,16,32], index: 0, kind: input, shape index: {}]   ;;  %s847_s1 = inlined_call_operand.vmem [shape: bf16[8,16,32], index: 1, kind: input, shape index: {}]   ;;  %s848_s2 = inlined_call_operand.vmem [shape: bf16[8,16,32], index: 2, kind: input, shape index: {}]   ;;  %s849_s3 = inlined_call_operand.vmem [shape: bf16[8,16,32], index: 3, kind: output, shape index: {}]  }
   0x1   :  { %s786_s14 = smov 0  }
   0x2 LB: > { %s32_s15 = sadd.s32 1, %s752_s13  ;;  %p649_p0 = scmp.ge.s32.totalorder %s756_s14, 1  ;;  %s756_s14 = sphi %s786_s14, %s13_s14   ;;  %s752_s13 = sphi %s784_s13, %s851_s13   ;;  %s748_s12 = sphi %s782_s12, %s850_s12  }
   0x3   : > { %p34_p1 = scmp.ge.s32.totalorder %s32_s15, 8  ;;  %p199_p2 = scmp.lt.s32.totalorder %s756_s14, 9 }
   0x5   : > { %s853_s15 = smov (%p34_p1, %s32_s15), 0  ;;  %p200_p3 = pnand %p649_p0, %p199_p2 }
   0x6   : > { %p250_p4 = scmp.lt.s32.totalorder (!%p200_p3), %s748_s12, 7 }
   0x7   : > { %203 = sbr.rel (%p200_p3) target bundleno = 798 (0x31e), region = 32 }
   0xc   : > { %vm294_vm0 = vcmask 261120   ;;  %v758_v0 = vmov 0.0   ;;  %vm759_vm1 = vmmov 0   ;;  %s855_s12 = smov (!%p250_p4, %s748_s12), 7  ;;  %vm297_vm2 = vcmask 7168  }
   0xd   : > { %677 = vmatprep.subr.bf16.mxu0 %v758_v0  ;;  %295 = vst.msk [vmem:[#allocation2] sm:$0xff] %vm294_vm0, %v758_v0  ;;  %296 = vst.msk [vmem:[#allocation2 + $0x8] sm:$0xff] %vm294_vm0, %v758_v0  ;;  %679 = vmatprep.mubr.msk.bf16.mxu0 %vm759_vm1, %v758_v0  ;;  %s802_s16 = sshll.u32 %s855_s12, 3  ;;  %v760_v4 = vmov -1e+30   ;;  %vm372_vm3 = vcmask 130048  }
   0xe   : > { %683 = vmatprep.subr.bf16.mxu1 %v758_v0  ;;  %685 = vmatprep.mubr.msk.bf16.mxu1 %vm759_vm1, %v758_v0  ;;  %s267_s19 = scalar_lea.vmem %s847_s1, %s802_s16  ;;  %s257_s22 = scalar_lea.vmem %s846_s0, %s802_s16  ;;  %298 = vst.msk [vmem:[#allocation3] sm:$0xff] %vm297_vm2, %v760_v4  ;;  %299 = vst.msk [vmem:[#allocation3 + $0x8] sm:$0xff] %vm297_vm2, %v760_v4  ;;  %v761_v13 = vmov 0   ;;  %vm516_vm4 = vcmask 257024  }
   0xf   : > { %v719_v1 = vld [vmem:[%s267_s19] sm:$0xff]   ;;  %300 = vst.msk [vmem:[#allocation4] sm:$0xff] %vm297_vm2, %v758_v0  ;;  %301 = vst.msk [vmem:[#allocation4 + $0x8] sm:$0xff] %vm297_vm2, %v758_v0  ;;  %717 = vset.pattern.permute.xlu1 %v761_v13  ;;  %718 = vset.pattern.permute.xlu0 %v761_v13  ;;  %s277_s25 = scalar_lea.vmem %s848_s2, %s802_s16  ;;  %s287_s28 = scalar_lea.vmem %s849_s3, %s802_s16 }
  0x10   : > { %v323_v2 = vsel %vm294_vm0, %v719_v1, 0  ;;  %v720_v3 = vld [vmem:[%s257_s22] sm:$0xff]  }
  0x11   : > { %678 = vmatpush3.bf16.xpose.msra.mxu0 %v323_v2  ;;  %v721_v22 = vld [vmem:[%s277_s25] sm:$0xff]  }
  0x12   : > { %684 = vmatpush3.bf16.msra.mxu1 %v721_v22 }
  0x14   : > { %v418_v50 = vld [vmem:[#allocation2] sm:$0xff]  ;;  %v419_v53 = vld [vmem:[#allocation2 + $0x8] sm:$0xff] }
  0x15   : > { %v368_v14 = vld [vmem:[#allocation3] sm:$0xff]  ;;  %v369_v17 = vld [vmem:[#allocation3 + $0x8] sm:$0xff] }
  0x16   : > { %v370_v38 = vld [vmem:[#allocation4] sm:$0xff]  ;;  %v371_v41 = vld [vmem:[#allocation4 + $0x8] sm:$0xff] }
  0x18   : > { %680 = vmatmul.mubr.msk.bf16.vlgmr.msra.gmra.mxu0 %vm294_vm0, %v720_v3 }
  0xd8   : > { %v359_v5 = vpop.f32.mrf.mxu0 }
  0xd9   : > { %v366_v6 = vmul.f32 0.17677669, %v359_v5 }
  0xda   : > { %v681_v7 = vpop.f32.mrf.mxu0 }
  0xdb   : > { %v373_v8 = vsel %vm372_vm3, %v366_v6, -inf }
  0xdc   : > { %374 = vmax.xlane.f32.xlu0 %v373_v8  ;;  %v362_v9 = vpop.f32.mrf.mxu0 }
  0xdd   : > { %v367_v10 = vmul.f32 0.17677669, %v362_v9 }
  0xde   : > { %v682_v11 = vpop.f32.mrf.mxu0 }
  0xdf   : > { %v376_v12 = vsel %vm372_vm3, %v367_v10, -inf }
  0xe0   : > { %377 = vmax.xlane.f32.xlu0 %v376_v12 }
 0x165   : > { %v375_v15 = vpop.xlane.xlu0 %374 }
 0x166   : > { %v379_v16 = vmax.f32 %v368_v14, %v375_v15 }
 0x168   : > { %v381_v18 = vsub.f32 %v368_v14, %v379_v16  ;;  %416 = vst.msk [vmem:[#allocation3] sm:$0xff] %vm297_vm2, %v379_v16  ;;  %389 = vperm.xlu1 %717, %v379_v16  }
 0x169   : > { %v378_v19 = vpop.xlane.xlu0 %377 }
 0x16a   : > { %v380_v20 = vmax.f32 %v369_v17, %v378_v19  ;;  %v383_v35 = vmul.f32 1.442695, %v381_v18 }
 0x16c   : > { %v382_v21 = vsub.f32 %v369_v17, %v380_v20  ;;  %417 = vst.msk [vmem:[#allocation3 + $0x8] sm:$0xff] %vm297_vm2, %v380_v20  ;;  %394 = vperm.xlu1 %717, %v380_v20  }
 0x16e   : > { %v385_v32 = vmul.f32 1.442695, %v382_v21 }
 0x1e3   : > { %v390_v23 = vpop.permute.xlu1 %389 }
 0x1e4   : > { %v397_v24 = vsub.f32 %v366_v6, %v390_v23 }
 0x1e6   : > { %v399_v25 = vmul.f32 1.442695, %v397_v24 }
 0x1e7   : > { %v395_v26 = vpop.permute.xlu1 %394 }
 0x1e8   : > { %722 = vpow2.f32 %v399_v25  ;;  %v398_v27 = vsub.f32 %v367_v10, %v395_v26 }
 0x1ea   : > { %v401_v28 = vmul.f32 1.442695, %v398_v27 }
 0x1ec   : > { %724 = vpow2.f32 %v401_v28 }
 0x1ed   : > { %726 = vpow2.f32 %v385_v32 }
 0x1ee   : > { %728 = vpow2.f32 %v383_v35 }
 0x1f5   : > { %v723_v29 = vpop.eup %722 }
 0x1f6   : > { %v405_v30 = vsel %vm372_vm3, %v723_v29, 0.0 }
 0x1f7   : > { %406 = vadd.xlane.f32.xlu0 %v405_v30 }
 0x1f9   : > { %v725_v31 = vpop.eup %724 }
 0x1fa   : > { %v408_v33 = vsel %vm372_vm3, %v725_v31, 0.0  ;;  %v432_v34 = vpack.c.bf16 %v725_v31, %v723_v29  ;;  %v727_v36 = vpop.eup %726 }
 0x1fb   : > { %409 = vadd.xlane.f32.xlu1 %v408_v33  ;;  %v729_v37 = vpop.eup %728  ;;  %v404_v43 = vmul.f32 %v727_v36, %v371_v41 }
 0x1fc   : > { %686 = vmatmul.mubr.msk.bf16.vlgmr.msra.gmra.mxu1 %vm372_vm3, %v432_v34  ;;  %v403_v39 = vmul.f32 %v729_v37, %v370_v38 }
 0x20c   : > { %427 = vperm.xlu1 %717, %v727_v36  }
 0x20d   : > { %422 = vperm.xlu0 %718, %v729_v37  }
 0x280   : > { %v407_v40 = vpop.xlane.xlu0 %406 }
 0x281   : > { %v411_v42 = vadd.f32 %v407_v40, %v403_v39 }
 0x283   : > { %414 = vst.msk [vmem:[#allocation4] sm:$0xff] %vm297_vm2, %v411_v42 }
 0x284   : > { %v410_v44 = vpop.xlane.xlu1 %409 }
 0x285   : > { %v412_v45 = vadd.f32 %v410_v44, %v404_v43 }
 0x287   : > { %415 = vst.msk [vmem:[#allocation4 + $0x8] sm:$0xff] %vm297_vm2, %v412_v45 }
 0x288   : > { %v423_v51 = vpop.permute.xlu0 %422  ;;  %v428_v54 = vpop.permute.xlu1 %427 }
 0x289   : > { %v430_v52 = vmul.f32 %v423_v51, %v418_v50  ;;  %v431_v58 = vmul.f32 %v428_v54, %v419_v53 }
 0x28a   : > { %v490_v46 = vld [vmem:[#allocation4] sm:$0xff] }
 0x28b   : > { %730 = vrcp.f32 %v490_v46 }
 0x28e   : > { %v491_v47 = vld [vmem:[#allocation4 + $0x8] sm:$0xff] }
 0x28f   : > { %732 = vrcp.f32 %v491_v47 }
 0x298   : > { %v731_v48 = vpop.eup %730 }
 0x299   : > { %498 = vperm.xlu0 %718, %v731_v48  }
 0x29c   : > { %v733_v49 = vpop.eup %732 }
 0x29d   : > { %503 = vperm.xlu0 %718, %v733_v49  }
 0x2bc   : > { %v476_v55 = vpop.f32.mrf.mxu1 }
 0x2bd   : > { %v483_v56 = vadd.f32 %v476_v55, %v430_v52 }
 0x2be   : > { %v687_v57 = vpop.f32.mrf.mxu1 }
 0x2bf   : > { %485 = vst.msk [vmem:[#allocation2] sm:$0xff] %vm294_vm0, %v483_v56 }
 0x2c0   : > { %v479_v59 = vpop.f32.mrf.mxu1 }
 0x2c1   : > { %v484_v60 = vadd.f32 %v479_v59, %v431_v58 }
 0x2c2   : > { %v688_v61 = vpop.f32.mrf.mxu1 }
 0x2c3   : > { %486 = vst.msk [vmem:[#allocation2 + $0x8] sm:$0xff] %vm294_vm0, %v484_v60 }
 0x2c6   : > { %v494_v62 = vld [vmem:[#allocation2] sm:$0xff] }
 0x2ca   : > { %v495_v2 = vld [vmem:[#allocation2 + $0x8] sm:$0xff] }
 0x314   : > { %v499_v63 = vpop.permute.xlu0 %498 }
 0x315   : > { %v506_v0 = vmul.f32 %v499_v63, %v494_v62 }
 0x317   : > { %v671_v1 = vpack.c.bf16 %v506_v0, %v506_v0 }
 0x318   : > { %v504_v3 = vpop.permute.xlu0 %503 }
 0x319   : > { %517 = vst.msk [vmem:[%s287_s28] sm:$0xf] %vm516_vm4, %v671_v1  ;;  %v507_v4 = vmul.f32 %v504_v3, %v495_v2 }
 0x31b   : > { %v672_v5 = vpack.c.bf16 %v507_v4, %v507_v4 }
 0x31d   : > { %518 = vst.msk [vmem:[%s287_s28 + $0x4] sm:$0xf] %vm516_vm4, %v672_v5 }
 0x31e PF: > { %s13_s14 = sadd.s32 1, %s756_s14   ;;  %s850_s12 = smov %s752_s13 }
 0x31f   : > { %p10_p5 = scmp.ge.s32.totalorder %s13_s14, 10   ;;  %s851_s13 = smov %s853_s15 }
 0x321   :  { %12 = sbr.rel (!%p10_p5) target bundleno = 2 (0x2), region = 76 }

// kernel: encoder_layer_forward.8
= control target key start
LH: loop header
LB: loop body
LE: loop exit
PB: predicated region body
PF: predicated region fallthrough
CT: control target
= control target key end

     0   :  { %v518_v33 = vmov 0   ;;  %s693_s0 = inlined_call_operand.vmem [shape: bf16[32,128], index: 0, kind: input, shape index: {}]   ;;  %s694_s1 = inlined_call_operand.vmem [shape: bf16[128,256], index: 1, kind: input, shape index: {}]   ;;  %s695_s3 = inlined_call_operand.vmem [shape: f32[1,128], index: 3, kind: input, shape index: {}]   ;;  %s696_s4 = inlined_call_operand.vmem [shape: f32[1,128], index: 4, kind: input, shape index: {}]   ;;  %s697_s2 = inlined_call_operand.vmem [shape: f32[1,256], index: 2, kind: input, shape index: {}]   ;;  %s698_s5 = inlined_call_operand.vmem [shape: bf16[32,256], index: 5, kind: output, shape index: {}]  }
   0x1   :  { %v445_v0 = vld [vmem:[%s693_s0] sm:$0xff]   ;;  %v452_v1 = vld [vmem:[%s693_s0 + $0x8] sm:$0xff]   ;;  %v470_v6 = vld [vmem:[%s694_s1 + $0x74] ss:$8 sps:$4 sm:$0xff]   ;;  %246 = vmatprep.mubr.bf16.mxu0 %v518_v33  ;;  %256 = vmatprep.mubr.bf16.mxu1 %v518_v33 }
   0x2   :  { %v446_v2 = vunpack.c.l.bf16 %v445_v0  ;;  %v450_v3 = vunpack.c.l.bf16 %v452_v1  ;;  %v447_v4 = vunpack.c.h.bf16 %v445_v0  ;;  %v451_v5 = vunpack.c.h.bf16 %v452_v1  ;;  %v472_v7 = vld [vmem:[%s694_s1 + $0x70] ss:$8 sps:$4 sm:$0xff]   ;;  %214 = vmatprep.subr.bf16.mxu0 %v470_v6  ;;  %453 = vmatprep.subr.bf16.mxu1 %v470_v6  ;;  %v473_v24 = vld [vmem:[%s694_s1 + $0x64] ss:$8 sps:$4 sm:$0xff]   ;;  %v475_v25 = vld [vmem:[%s694_s1 + $0x60] ss:$8 sps:$4 sm:$0xff]  }
   0x3   :  { %215 = vmatpush1.bf16.msra.mxu0 %v472_v7  ;;  %461 = vmatpush1.bf16.msra.mxu1 %v472_v7  ;;  %v476_v26 = vld [vmem:[%s694_s1 + $0x54] ss:$8 sps:$4 sm:$0xff]   ;;  %v478_v27 = vld [vmem:[%s694_s1 + $0x50] ss:$8 sps:$4 sm:$0xff]   ;;  %v479_v28 = vld [vmem:[%s694_s1 + $0x44] ss:$8 sps:$4 sm:$0xff]   ;;  %v296_v7 = vlaneseq }
   0x4   :  { %41 = vadd.xlane.f32.xlu0 %v446_v2  ;;  %45 = vadd.xlane.f32.xlu1 %v450_v3  ;;  %v481_v29 = vld [vmem:[%s694_s1 + $0x40] ss:$8 sps:$4 sm:$0xff]   ;;  %v482_v30 = vld [vmem:[%s694_s1 + $0x34] ss:$8 sps:$4 sm:$0xff]   ;;  %v484_v31 = vld [vmem:[%s694_s1 + $0x30] ss:$8 sps:$4 sm:$0xff]  }
   0x5   :  { %216 = vmatprep.subr.bf16.mxu0 %v473_v24  ;;  %454 = vmatprep.subr.bf16.mxu1 %v473_v24  ;;  %v485_v32 = vld [vmem:[%s694_s1 + $0x24] ss:$8 sps:$4 sm:$0xff]   ;;  %v487_v34 = vld [vmem:[%s694_s1 + $0x20] ss:$8 sps:$4 sm:$0xff]   ;;  %v488_v35 = vld [vmem:[%s694_s1 + $0x14] ss:$8 sps:$4 sm:$0xff]  }
   0x6   :  { %v490_v36 = vld [vmem:[%s694_s1 + $0x10] ss:$8 sps:$4 sm:$0xff]   ;;  %v491_v37 = vld [vmem:[%s694_s1 + $0x4] ss:$8 sps:$4 sm:$0xff]   ;;  %v493_v38 = vld [vmem:[%s694_s1] ss:$8 sps:$4 sm:$0xff]  }
   0x7   :  { %217 = vmatpush1.bf16.msra.mxu0 %v475_v25  ;;  %462 = vmatpush1.bf16.msra.mxu1 %v475_v25  ;;  %v418_v53 = vld [vmem:[%s695_s3] ss:$0 sm:$0xff] }
   0x8   :  { %43 = vadd.xlane.f32.xlu0 %v447_v4  ;;  %47 = vadd.xlane.f32.xlu1 %v451_v5  ;;  %v419_v58 = vld [vmem:[%s696_s4] ss:$0 sm:$0xff] }
   0x9   :  { %218 = vmatprep.subr.bf16.mxu0 %v476_v26  ;;  %455 = vmatprep.subr.bf16.mxu1 %v476_v26 }
   0xb   :  { %219 = vmatpush1.bf16.msra.mxu0 %v478_v27  ;;  %463 = vmatpush1.bf16.msra.mxu1 %v478_v27 }
   0xc   :  { %220 = vmatprep.subr.bf16.mxu0 %v479_v28  ;;  %456 = vmatprep.subr.bf16.mxu1 %v479_v28 }
   0xf   :  { %221 = vmatpush1.bf16.msra.mxu0 %v481_v29  ;;  %464 = vmatpush1.bf16.msra.mxu1 %v481_v29 }
  0x10   :  { %222 = vmatprep.subr.bf16.mxu0 %v482_v30  ;;  %457 = vmatprep.subr.bf16.mxu1 %v482_v30 }
  0x13   :  { %223 = vmatpush1.bf16.msra.mxu0 %v484_v31  ;;  %465 = vmatpush1.bf16.msra.mxu1 %v484_v31 }
  0x14   :  { %224 = vmatprep.subr.bf16.mxu0 %v485_v32  ;;  %458 = vmatprep.subr.bf16.mxu1 %v485_v32 }
  0x17   :  { %225 = vmatpush1.bf16.msra.mxu0 %v487_v34  ;;  %466 = vmatpush1.bf16.msra.mxu1 %v487_v34 }
  0x18   :  { %226 = vmatprep.subr.bf16.mxu0 %v488_v35  ;;  %459 = vmatprep.subr.bf16.mxu1 %v488_v35 }
  0x1b   :  { %227 = vmatpush1.bf16.msra.mxu0 %v490_v36  ;;  %467 = vmatpush1.bf16.msra.mxu1 %v490_v36 }
  0x1c   :  { %228 = vmatprep.subr.bf16.mxu0 %v491_v37  ;;  %460 = vmatprep.subr.bf16.mxu1 %v491_v37 }
  0x1f   :  { %229 = vmatpush1.bf16.msra.mxu0 %v493_v38  ;;  %468 = vmatpush1.bf16.msra.mxu1 %v493_v38 }
  0x8d   :  { %v42_v8 = vpop.xlane.xlu0 %41  ;;  %v46_v9 = vpop.xlane.xlu1 %45 }
  0x8e   :  { %v50_v10 = vmul.f32 0.0078125, %v42_v8  ;;  %v52_v11 = vmul.f32 0.0078125, %v46_v9  ;;  %v297_v8 = vshrl.u32 %v296_v7, 7 }
  0x90   :  { %v561_v12 = vsub.f32 %v446_v2, %v50_v10  ;;  %v563_v13 = vsub.f32 %v450_v3, %v52_v11  ;;  %v298_v9 = vsub.s32 0, %v297_v8  ;;  %v294_v10 = vld [vmem:[%s697_s2] sm:$0x3]  ;;  %v302_v11 = vsub.s32 1, %v297_v8 }
  0x91   :  { %v44_v14 = vpop.xlane.xlu0 %43  ;;  %v48_v15 = vpop.xlane.xlu1 %47 }
  0x92   :  { %v51_v16 = vmul.f32 0.0078125, %v44_v14  ;;  %v58_v17 = vmul.f32 %v561_v12, %v561_v12  ;;  %v53_v18 = vmul.f32 0.0078125, %v48_v15  ;;  %v60_v21 = vmul.f32 %v563_v13, %v563_v13 }
  0x94   :  { %v567_v19 = vsub.f32 %v447_v4, %v51_v16  ;;  %62 = vadd.xlane.f32.xlu0 %v58_v17  ;;  %v569_v20 = vsub.f32 %v451_v5, %v53_v18 }
  0x96   :  { %v59_v22 = vmul.f32 %v567_v19, %v567_v19  ;;  %v61_v23 = vmul.f32 %v569_v20, %v569_v20 }
  0x98   :  { %66 = vadd.xlane.f32.xlu0 %v60_v21  ;;  %64 = vadd.xlane.f32.xlu1 %v59_v22 }
  0x9c   :  { %68 = vadd.xlane.f32.xlu1 %v61_v23 }
 0x11d   :  { %v63_v39 = vpop.xlane.xlu0 %62 }
 0x11e   :  { %v70_v40 = vmul.f32 0.0078125, %v63_v39 }
 0x120   :  { %v74_v41 = vadd.f32 1e-06, %v70_v40 }
 0x121   :  { %v65_v42 = vpop.xlane.xlu1 %64  ;;  %v67_v43 = vpop.xlane.xlu0 %66 }
 0x122   :  { %494 = vrsqrt.f32 %v74_v41  ;;  %v71_v44 = vmul.f32 0.0078125, %v65_v42  ;;  %v72_v45 = vmul.f32 0.0078125, %v67_v43 }
 0x124   :  { %v75_v46 = vadd.f32 1e-06, %v71_v44  ;;  %v76_v47 = vadd.f32 1e-06, %v72_v45 }
 0x125   :  { %v69_v48 = vpop.xlane.xlu1 %68 }
 0x126   :  { %496 = vrsqrt.f32 %v75_v46  ;;  %v73_v49 = vmul.f32 0.0078125, %v69_v48 }
 0x127   :  { %498 = vrsqrt.f32 %v76_v47 }
 0x128   :  { %v77_v50 = vadd.f32 1e-06, %v73_v49 }
 0x12a   :  { %500 = vrsqrt.f32 %v77_v50 }
 0x12f   :  { %v495_v51 = vpop.eup %494 }
 0x130   :  { %v82_v52 = vmul.f32 %v495_v51, %v561_v12  ;;  %v299_v12 = vrot.slane %v294_v10, %v298_v9 }
 0x132   :  { %v93_v57 = vmul.f32 %v418_v53, %v82_v52 }
 0x133   :  { %v497_v54 = vpop.eup %496 }
 0x134   :  { %v499_v55 = vpop.eup %498  ;;  %v83_v56 = vmul.f32 %v497_v54, %v567_v19  ;;  %v104_v62 = vadd.f32 %v419_v58, %v93_v57 }
 0x135   :  { %v84_v59 = vmul.f32 %v499_v55, %v563_v13  ;;  %v303_v13 = vrot.slane %v294_v10, %v302_v11 }
 0x136   :  { %v94_v60 = vmul.f32 %v418_v53, %v83_v56 }
 0x137   :  { %v501_v61 = vpop.eup %500  ;;  %v95_v1 = vmul.f32 %v418_v53, %v84_v59 }
 0x138   :  { %v105_v63 = vadd.f32 %v419_v58, %v94_v60  ;;  %v85_v0 = vmul.f32 %v501_v61, %v569_v20 }
 0x139   :  { %v106_v4 = vadd.f32 %v419_v58, %v95_v1 }
 0x13a   :  { %v108_v2 = vpack.c.bf16 %v105_v63, %v104_v62  ;;  %v96_v3 = vmul.f32 %v418_v53, %v85_v0 }
 0x13c   :  { %247 = vmatmul.mubr.bf16.vlgmr.msra.gmra.mxu0 %v108_v2  ;;  %v107_v5 = vadd.f32 %v419_v58, %v96_v3 }
 0x13e   :  { %v109_v6 = vpack.c.bf16 %v107_v5, %v106_v4 }
 0x140   :  { %257 = vmatmul.mubr.bf16.vlgmr.msra.gmra.mxu1 %v109_v6 }
 0x1fc   :  { %v248_v14 = vpop.f32.mrf.mxu0 }
 0x1fd   :  { %v632_v15 = vadd.f32 %v299_v12, %v248_v14 }
 0x1fe   :  { %v250_v16 = vpop.f32.mrf.mxu0 }
 0x1ff   :  { %v322_v17 = vmul.f32 0.044715, %v632_v15  ;;  %v635_v18 = vadd.f32 %v303_v13, %v250_v16  ;;  %v314_v9 = vmul.f32 0.5, %v632_v15 }
 0x200   :  { %v252_v19 = vpop.f32.mrf.mxu0  ;;  %v258_v20 = vpop.f32.mrf.mxu1 }
 0x201   :  { %v330_v21 = vmul.f32 %v322_v17, %v632_v15  ;;  %v323_v22 = vmul.f32 0.044715, %v635_v18  ;;  %v639_v23 = vadd.f32 %v299_v12, %v252_v19  ;;  %v641_v24 = vadd.f32 %v299_v12, %v258_v20 }
 0x202   :  { %v254_v25 = vpop.f32.mrf.mxu0  ;;  %v260_v26 = vpop.f32.mrf.mxu1  ;;  %v315_v10 = vmul.f32 0.5, %v635_v18 }
 0x203   :  { %v338_v27 = vmul.f32 %v330_v21, %v632_v15  ;;  %v331_v28 = vmul.f32 %v323_v22, %v635_v18  ;;  %v324_v29 = vmul.f32 0.044715, %v639_v23  ;;  %v326_v30 = vmul.f32 0.044715, %v641_v24 }
 0x204   :  { %v647_v31 = vadd.f32 %v303_v13, %v254_v25  ;;  %v649_v32 = vadd.f32 %v303_v13, %v260_v26  ;;  %v262_v33 = vpop.f32.mrf.mxu1  ;;  %v316_v25 = vmul.f32 0.5, %v639_v23 }
 0x205   :  { %v346_v34 = vadd.f32 %v338_v27, %v632_v15  ;;  %v339_v35 = vmul.f32 %v331_v28, %v635_v18  ;;  %v332_v36 = vmul.f32 %v324_v29, %v639_v23  ;;  %v654_v37 = vadd.f32 %v299_v12, %v262_v33 }
 0x206   :  { %v334_v38 = vmul.f32 %v326_v30, %v641_v24  ;;  %v325_v39 = vmul.f32 0.044715, %v647_v31  ;;  %v327_v43 = vmul.f32 0.044715, %v649_v32  ;;  %v264_v44 = vpop.f32.mrf.mxu1  ;;  %v317_v26 = vmul.f32 0.5, %v647_v31 }
 0x207   :  { %v354_v40 = vmul.f32 0.7978846, %v346_v34  ;;  %v347_v41 = vadd.f32 %v339_v35, %v635_v18  ;;  %v340_v42 = vmul.f32 %v332_v36, %v639_v23  ;;  %v328_v47 = vmul.f32 0.044715, %v654_v37 }
 0x208   :  { %v342_v45 = vmul.f32 %v334_v38, %v641_v24  ;;  %v333_v46 = vmul.f32 %v325_v39, %v647_v31  ;;  %v335_v50 = vmul.f32 %v327_v43, %v649_v32  ;;  %v313_v54 = vadd.f32 %v303_v13, %v264_v44 }
 0x209   :  { %502 = vtanh.f32 %v354_v40  ;;  %v355_v48 = vmul.f32 0.7978846, %v347_v41  ;;  %v348_v49 = vadd.f32 %v340_v42, %v639_v23  ;;  %v336_v53 = vmul.f32 %v328_v47, %v654_v37 }
 0x20a   :  { %v350_v51 = vadd.f32 %v342_v45, %v641_v24  ;;  %v341_v52 = vmul.f32 %v333_v46, %v647_v31  ;;  %v343_v56 = vmul.f32 %v335_v50, %v649_v32  ;;  %v329_v61 = vmul.f32 0.044715, %v313_v54 }
 0x20b   :  { %504 = vtanh.f32 %v355_v48  ;;  %v356_v55 = vmul.f32 0.7978846, %v348_v49  ;;  %v344_v59 = vmul.f32 %v336_v53, %v654_v37  ;;  %v318_v15 = vmul.f32 0.5, %v641_v24 }
 0x20c   :  { %v358_v57 = vmul.f32 0.7978846, %v350_v51  ;;  %v349_v58 = vadd.f32 %v341_v52, %v647_v31  ;;  %v351_v60 = vadd.f32 %v343_v56, %v649_v32  ;;  %v337_v1 = vmul.f32 %v329_v61, %v313_v54 }
 0x20d   :  { %506 = vtanh.f32 %v356_v55  ;;  %v352_v63 = vadd.f32 %v344_v59, %v654_v37  ;;  %v319_v18 = vmul.f32 0.5, %v649_v32  ;;  %v320_v24 = vmul.f32 0.5, %v654_v37 }
 0x20e   :  { %508 = vtanh.f32 %v358_v57  ;;  %v357_v62 = vmul.f32 0.7978846, %v349_v58  ;;  %v359_v0 = vmul.f32 0.7978846, %v351_v60  ;;  %v345_v3 = vmul.f32 %v337_v1, %v313_v54 }
 0x20f   :  { %v360_v2 = vmul.f32 0.7978846, %v352_v63  ;;  %v321_v31 = vmul.f32 0.5, %v313_v54 }
 0x210   :  { %510 = vtanh.f32 %v357_v62  ;;  %v353_v4 = vadd.f32 %v345_v3, %v313_v54 }
 0x211   :  { %512 = vtanh.f32 %v359_v0 }
 0x212   :  { %514 = vtanh.f32 %v360_v2  ;;  %v361_v5 = vmul.f32 0.7978846, %v353_v4 }
 0x214   :  { %516 = vtanh.f32 %v361_v5 }
 0x216   :  { %v503_v6 = vpop.eup %502 }
 0x217   :  { %v370_v7 = vadd.f32 1.0, %v503_v6 }
 0x218   :  { %v505_v8 = vpop.eup %504 }
 0x219   :  { %v371_v11 = vadd.f32 1.0, %v505_v8  ;;  %v378_v14 = vmul.f32 %v370_v7, %v314_v9 }
 0x21a   :  { %v507_v12 = vpop.eup %506 }
 0x21b   :  { %v509_v13 = vpop.eup %508  ;;  %v379_v16 = vmul.f32 %v371_v11, %v315_v10  ;;  %v372_v17 = vadd.f32 1.0, %v507_v12 }
 0x21c   :  { %v374_v21 = vadd.f32 1.0, %v509_v13 }
 0x21d   :  { %v511_v19 = vpop.eup %510  ;;  %v440_v20 = vpack.c.bf16 %v379_v16, %v378_v14  ;;  %v380_v30 = vmul.f32 %v372_v17, %v316_v25 }
 0x21e   :  { %v513_v22 = vpop.eup %512  ;;  %v373_v27 = vadd.f32 1.0, %v511_v19  ;;  %v382_v34 = vmul.f32 %v374_v21, %v318_v15 }
 0x21f   :  { %410 = vst [vmem:[%s698_s5] sm:$0xff] %v440_v20  ;;  %v375_v28 = vadd.f32 1.0, %v513_v22  ;;  %v515_v29 = vpop.eup %514 }
 0x220   :  { %v381_v33 = vmul.f32 %v373_v27, %v317_v26  ;;  %v376_v23 = vadd.f32 1.0, %v515_v29 }
 0x221   :  { %v383_v35 = vmul.f32 %v375_v28, %v319_v18  ;;  %v517_v39 = vpop.eup %516 }
 0x222   :  { %v441_v36 = vpack.c.bf16 %v381_v33, %v380_v30  ;;  %v377_v32 = vadd.f32 1.0, %v517_v39  ;;  %v384_v40 = vmul.f32 %v376_v23, %v320_v24 }
 0x223   :  { %v442_v38 = vpack.c.bf16 %v383_v35, %v382_v34 }
 0x224   :  { %411 = vst [vmem:[%s698_s5 + $0x8] sm:$0xff] %v441_v36  ;;  %v385_v41 = vmul.f32 %v377_v32, %v321_v31 }
 0x225   :  { %412 = vst [vmem:[%s698_s5 + $0x10] sm:$0xff] %v442_v38 }
 0x226   :  { %v443_v42 = vpack.c.bf16 %v385_v41, %v384_v40 }
 0x228   :  { %413 = vst [vmem:[%s698_s5 + $0x18] sm:$0xff] %v443_v42 }

// kernel: encoder_layer_forward.9
= control target key start
LH: loop header
LB: loop body
LE: loop exit
PB: predicated region body
PF: predicated region fallthrough
CT: control target
= control target key end

     0   :  { %s546_s0 = inlined_call_operand.vmem [shape: bf16[32,256], index: 0, kind: input, shape index: {}]   ;;  %s547_s1 = inlined_call_operand.vmem [shape: bf16[256,128], index: 1, kind: input, shape index: {}]   ;;  %s548_s2 = inlined_call_operand.vmem [shape: f32[1,128], index: 2, kind: input, shape index: {}]   ;;  %s549_s3 = inlined_call_operand.vmem [shape: bf16[32,128], index: 3, kind: input, shape index: {}]   ;;  %s550_s4 = inlined_call_operand.hbm [shape: bf16[32,128], index: 4, kind: output, shape index: {}]  }
   0x1   :  { %v402_v0 = vld [vmem:[%s547_s1 + $0x78] sm:$0xff]   ;;  %v404_v2 = vld [vmem:[%s547_s1 + $0x70] sm:$0xff]   ;;  %v406_v4 = vld [vmem:[%s547_s1 + $0x68] sm:$0xff]  }
   0x2   :  { %v403_v1 = vld [vmem:[%s547_s1 + $0x38] sm:$0xff]   ;;  %355 = vmatprep.subr.bf16.mxu0 %v402_v0  ;;  %383 = vmatprep.subr.bf16.mxu1 %v402_v0  ;;  %v405_v3 = vld [vmem:[%s547_s1 + $0x30] sm:$0xff]   ;;  %v407_v5 = vld [vmem:[%s547_s1 + $0x28] sm:$0xff]  }
   0x3   :  { %356 = vmatpush3.bf16.msra.mxu0 %v403_v1  ;;  %391 = vmatpush3.bf16.msra.mxu1 %v403_v1  ;;  %v408_v6 = vld [vmem:[%s547_s1 + $0x60] sm:$0xff]   ;;  %v410_v8 = vld [vmem:[%s547_s1 + $0x58] sm:$0xff]   ;;  %v412_v10 = vld [vmem:[%s547_s1 + $0x50] sm:$0xff]  }
   0x4   :  { %357 = vmatprep.subr.bf16.mxu0 %v404_v2  ;;  %384 = vmatprep.subr.bf16.mxu1 %v404_v2  ;;  %v409_v7 = vld [vmem:[%s547_s1 + $0x20] sm:$0xff]   ;;  %v411_v9 = vld [vmem:[%s547_s1 + $0x18] sm:$0xff]  }
   0x5   :  { %v420_v11 = vld [vmem:[%s546_s0 + $0x4] ss:$8 sps:$4 sm:$0xff]   ;;  %v423_v12 = vld [vmem:[%s546_s0 + $0x14] ss:$8 sps:$4 sm:$0xff]  }
   0x7   :  { %358 = vmatpush3.bf16.msra.mxu0 %v405_v3  ;;  %392 = vmatpush3.bf16.msra.mxu1 %v405_v3 }
   0x8   :  { %359 = vmatprep.subr.bf16.mxu0 %v406_v4  ;;  %385 = vmatprep.subr.bf16.mxu1 %v406_v4 }
   0xb   :  { %360 = vmatpush3.bf16.msra.mxu0 %v407_v5  ;;  %393 = vmatpush3.bf16.msra.mxu1 %v407_v5 }
   0xc   :  { %361 = vmatprep.subr.bf16.mxu0 %v408_v6  ;;  %386 = vmatprep.subr.bf16.mxu1 %v408_v6 }
   0xf   :  { %362 = vmatpush3.bf16.msra.mxu0 %v409_v7  ;;  %394 = vmatpush3.bf16.msra.mxu1 %v409_v7 }
  0x10   :  { %363 = vmatprep.subr.bf16.mxu0 %v410_v8  ;;  %387 = vmatprep.subr.bf16.mxu1 %v410_v8 }
  0x11   :  { %9 = vsyncpa [#allocation4], 0  ;;  %v413_v13 = vld [vmem:[%s547_s1 + $0x10] sm:$0xff]   ;;  %v414_v14 = vld [vmem:[%s547_s1 + $0x48] sm:$0xff]   ;;  %215 = vmatprep.mubr.bf16.mxu0 %v420_v11  ;;  %223 = vmatprep.mubr.bf16.mxu1 %v423_v12  ;;  %s446_s7 = smov [#allocation3]  }
  0x12   :  { %v415_v15 = vld [vmem:[%s547_s1 + $0x8] sm:$0xff]   ;;  %v416_v16 = vld [vmem:[%s547_s1 + $0x40] sm:$0xff]   ;;  %v421_v19 = vld [vmem:[%s546_s0 + $0x10] ss:$8 sps:$4 sm:$0xff]  }
  0x13   :  { %364 = vmatpush3.bf16.msra.mxu0 %v411_v9  ;;  %395 = vmatpush3.bf16.msra.mxu1 %v411_v9  ;;  %v417_v17 = vld [vmem:[%s547_s1] sm:$0xff]   ;;  %v353_v27 = vld [vmem:[%s549_s3 + $0x8] sm:$0xff]  }
  0x14   :  { %365 = vmatprep.subr.bf16.mxu0 %v412_v10  ;;  %388 = vmatprep.subr.bf16.mxu1 %v412_v10  ;;  %v418_v18 = vld [vmem:[%s546_s0] ss:$8 sps:$4 sm:$0xff]   ;;  %v341_v32 = vunpack.c.l.bf16 %v353_v27  ;;  %v342_v36 = vunpack.c.h.bf16 %v353_v27 }
  0x15   :  { %v336_v25 = vld [vmem:[%s549_s3] sm:$0xff]   ;;  %s295_s3 = sshll.u32 %s446_s7, 4  ;;  %s296_s3 = int_to_ptr.vmem [resolvable:$true] %s295_s3 }
  0x16   :  { %v326_v28 = vld [vmem:[%s548_s2] ss:$0 sm:$0xff]  ;;  %v337_v31 = vunpack.c.l.bf16 %v336_v25  ;;  %v338_v34 = vunpack.c.h.bf16 %v336_v25  ;;  %s424_s2 = scalar_lea.vmem %s296_s3, 256  ;;  %p429_p1 = scmp.lt.s32.totalorder %s296_s3, %s296_s3 }
  0x17   :  { %366 = vmatpush3.bf16.msra.mxu0 %v413_v13  ;;  %396 = vmatpush3.bf16.msra.mxu1 %v413_v13  ;;  %p425_p0 = scmp.ne.s32.totalorder %s296_s3, %s424_s2  ;;  %p430_p2 = scmp.lt.s32.totalorder %s424_s2, %s424_s2 }
  0x18   :  { %367 = vmatprep.subr.bf16.mxu0 %v414_v14  ;;  %389 = vmatprep.subr.bf16.mxu1 %v414_v14 }
  0x19   :  { %p431_p3 = por %p430_p2, %p429_p1 }
  0x1b   :  { %368 = vmatpush3.bf16.msra.mxu0 %v415_v15  ;;  %397 = vmatpush3.bf16.msra.mxu1 %v415_v15  ;;  %p432_p4 = pnand %p431_p3, %p425_p0 }
  0x1c   :  { %369 = vmatprep.subr.bf16.mxu0 %v416_v16  ;;  %390 = vmatprep.subr.bf16.mxu1 %v416_v16 }
  0x1f   :  { %370 = vmatpush3.bf16.msra.mxu0 %v417_v17  ;;  %398 = vmatpush3.bf16.msra.mxu1 %v417_v17 }
  0x22   :  { %216 = vmatmul.mubr.bf16.vlgmr.msra.gmra.mxu0 %v418_v18  ;;  %224 = vmatmul.mubr.bf16.vlgmr.msra.gmra.mxu1 %v421_v19 }
  0xe2   :  { %v371_v20 = vpop.f32.mrf.mxu0  ;;  %v377_v21 = vpop.f32.mrf.mxu1 }
  0xe4   :  { %v372_v22 = vpop.f32.mrf.mxu0  ;;  %v378_v23 = vpop.f32.mrf.mxu1 }
  0xe5   :  { %v373_v24 = vadd.f32 %v372_v22, %v371_v20  ;;  %v379_v26 = vadd.f32 %v378_v23, %v377_v21 }
  0xe6   :  { %v374_v29 = vpop.f32.mrf.mxu0  ;;  %v380_v30 = vpop.f32.mrf.mxu1 }
  0xe7   :  { %v254_v37 = vadd.f32 %v373_v24, %v326_v28  ;;  %v256_v38 = vadd.f32 %v379_v26, %v326_v28 }
  0xe8   :  { %v375_v33 = vpop.f32.mrf.mxu0  ;;  %v381_v35 = vpop.f32.mrf.mxu1 }
  0xe9   :  { %v376_v39 = vadd.f32 %v375_v33, %v374_v29  ;;  %v382_v40 = vadd.f32 %v381_v35, %v380_v30  ;;  %v266_v43 = vadd.f32 %v337_v31, %v254_v37  ;;  %v268_v44 = vadd.f32 %v341_v32, %v256_v38 }
  0xeb   :  { %v255_v41 = vadd.f32 %v376_v39, %v326_v28  ;;  %v257_v42 = vadd.f32 %v382_v40, %v326_v28 }
  0xed   :  { %v267_v45 = vadd.f32 %v338_v34, %v255_v41  ;;  %v269_v46 = vadd.f32 %v342_v36, %v257_v42 }
  0xef   :  { %v346_v47 = vpack.c.bf16 %v267_v45, %v266_v43  ;;  %v351_v48 = vpack.c.bf16 %v269_v46, %v268_v44 }
  0xf1   :  { %347 = vst [vmem:[#allocation3] sm:$0xff] %v346_v47   ;;  %354 = vst [vmem:[#allocation3 + $0x8] sm:$0xff] %v351_v48  }
  0xf2   :  { %435 = shalt.err (!%p432_p4)
}
  0xf3   :  { %s447_s8 = smov 64   ;;  %s448_s9 = smov 4  }
  0xf4   :  { %301 = dma.vmem_to_hbm [thread:$0]  %s296_s3, 256, %s550_s4, [#allocation4], %s447_s8, %s447_s8, %s448_s9  }
  0xf5   :  { %444 = dma.done.wait [#allocation4], 256  }
  0xf6   :  { %445 = vsyncadd [#allocation4], 4294967040 }
  0xf7   :  { %305 = vsyncpa [#allocation4], 1 }

</bundles_post_ra>
